<compile_context>
chip_gen: v5e
topology: v5e:2x2
jax: 0.10.0
libtpu: 0.0.40
codegen_flags: <defaults>
</compile_context>

<pallas_src>
import functools

import jax
import jax.numpy as jnp
import numpy as np
from jax import lax
from jax.experimental import pallas as pl
from jax.experimental.pallas import tpu as pltpu


_VMEM = pl.BlockSpec(memory_space=pltpu.MemorySpace.VMEM)


# ----------------------------------------------------------------------------
# small in-kernel helpers
# ----------------------------------------------------------------------------
def _idiv(v, d):
    """v // d for an int32 vector and a positive Python int d (pow2 -> shift)."""
    if d & (d - 1) == 0:
        return v >> (d.bit_length() - 1)
    return v // d


def _imod(v, d):
    """v % d for an int32 vector and a positive Python int d (pow2 -> and)."""
    if d & (d - 1) == 0:
        return v & (d - 1)
    return v % d


def _shift_lanes(v, k):
    """result[:, p] = v[:, p - k] with zero fill; k is a static Python int."""
    if k == 0:
        return v
    c, p = v.shape
    z = jnp.zeros((c, abs(k)), v.dtype)
    if k > 0:
        return jnp.concatenate([z, v[:, : p - k]], axis=1)
    return jnp.concatenate([v[:, -k:], z], axis=1)


# ----------------------------------------------------------------------------
# fused UpConv kernel
# ----------------------------------------------------------------------------
def _upconv_kernel(xu_ref, xd_ref, wt_ref, bt_ref, w1u_ref, w1d_ref, b1_ref,
                   w2_ref, b2_ref, out_ref, *, H, W):
    # xu_ref : (N, Cin, H*W)        decoder activation (coarse grid)
    # xd_ref : (N, Cout, 2H*2W)     encoder skip (fine grid)
    # wt_ref : (4, Cout, Cin)       transposed-conv taps, index ki*2+kj
    # w1u/w1d: (9, Cout, Cout)      conv1 taps split into up/down channel halves
    # w2_ref : (9, Cout, Cout)      conv2 taps
    # b*_ref : (Cout, 1)
    # out_ref: (N, Cout, 2H*2W)
    N, Cin, HW = xu_ref.shape
    _, Cout, PHW = xd_ref.shape
    W2, H2 = 2 * W, 2 * H
    P = N * PHW                                   # flattened fine pixels (lanes)
    f32 = jnp.float32

    # -- boundary masks for the 3x3 taps (derived from the lane index) --------
    p_iota = lax.broadcasted_iota(jnp.int32, (1, P), 1)
    xx = _imod(p_iota, W2)
    yy = _imod(_idiv(p_iota, W2), H2)
    mask_x = {-1: xx >= 1, 1: xx <= W2 - 2}
    mask_y = {-1: yy >= 1, 1: yy <= H2 - 2}

    def tap(v, oy, ox):
        # value of v at pixel (yy+oy, xx+ox) of the same image, zero outside.
        t = _shift_lanes(v, -(oy * W2 + ox))
        if ox != 0:
            t = jnp.where(mask_x[ox], t, 0.0)
        if oy != 0:
            t = jnp.where(mask_y[oy], t, 0.0)
        return t

    # -- 2x2 stride-2 transposed conv + in-kernel depth-to-space --------------
    # One-hot scatter (shared across images): coarse pixel q=(y,x) -> fine
    # column (2y)*W2 + 2x (the parity-(0,0) position).
    q = lax.broadcasted_iota(jnp.int32, (HW, PHW), 0)
    pp = lax.broadcasted_iota(jnp.int32, (HW, PHW), 1)
    qy, qx = _idiv(q, W), _imod(q, W)
    scat = jnp.where(pp == (2 * qy) * W2 + 2 * qx, 1.0, 0.0).astype(f32)

    # Spread coarse pixels to parity-(0,0) fine positions, per image
    # (per-image blocks are 128-aligned so the lane concat is cheap).
    Xs = jnp.concatenate(
        [jnp.dot(xu_ref[n], scat, preferred_element_type=f32) for n in range(N)],
        axis=1)                                                   # (Cin, P)

    up = jnp.zeros((Cout, P), f32)
    for ki in range(2):
        for kj in range(2):
            t = jnp.dot(wt_ref[ki * 2 + kj], Xs, preferred_element_type=f32)
            up = up + _shift_lanes(t, ki * W2 + kj)               # place parity
    up = up + bt_ref[...]                                         # (Cout, P)

    # -- skip connection; concat avoided by splitting conv1's weight ----------
    down = jnp.concatenate([xd_ref[n] for n in range(N)], axis=1)  # (Cout, P)

    # -- conv1 (3x3, pad 1) + bias + ReLU --------------------------------------
    acc = jnp.zeros((Cout, P), f32)
    for t_i in range(9):
        oy, ox = t_i // 3 - 1, t_i % 3 - 1
        acc = acc + jnp.dot(w1u_ref[t_i], tap(up, oy, ox),
                            preferred_element_type=f32)
        acc = acc + jnp.dot(w1d_ref[t_i], tap(down, oy, ox),
                            preferred_element_type=f32)
    h1 = jnp.maximum(acc + b1_ref[...], 0.0)

    # -- conv2 (3x3, pad 1) + bias + ReLU --------------------------------------
    acc2 = jnp.zeros((Cout, P), f32)
    for t_i in range(9):
        oy, ox = t_i // 3 - 1, t_i % 3 - 1
        acc2 = acc2 + jnp.dot(w2_ref[t_i], tap(h1, oy, ox),
                              preferred_element_type=f32)
    y2 = jnp.maximum(acc2 + b2_ref[...], 0.0)

    # -- lane-dense writeback, per image (aligned 128-multiple slices) --------
    for n in range(N):
        out_ref[n] = y2[:, n * PHW:(n + 1) * PHW]


# ----------------------------------------------------------------------------
# one-time parameter prep (hoisted out of the hot path)
# ----------------------------------------------------------------------------
def prepare_upconv_params(params):
    wt, bt, w1, b1, w2, b2 = params
    cin, cout = wt.shape[0], wt.shape[1]
    wt_k = jnp.transpose(wt, (2, 3, 1, 0)).reshape(4, cout, cin)      # (ki*2+kj, co, ci)
    w1_k = jnp.transpose(w1, (2, 3, 0, 1)).reshape(9, cout, 2 * cout)  # (ky*3+kx, co, ci)
    w1u, w1d = w1_k[:, :, :cout], w1_k[:, :, cout:]
    w2_k = jnp.transpose(w2, (2, 3, 0, 1)).reshape(9, cout, cout)
    return (wt_k, bt.reshape(cout, 1), w1u, w1d, b1.reshape(cout, 1),
            w2_k, b2.reshape(cout, 1))


# ----------------------------------------------------------------------------
# UpConv forward (merge_mode='concat', up_mode='transpose')
# ----------------------------------------------------------------------------
@jax.jit
def upconv_forward(from_down, from_up, prepped):
    """from_down: (N, Cout, 2H, 2W) NCHW;  from_up: (N, Cin, H, W) NCHW."""
    wt_k, bt1, w1u, w1d, b11, w2_k, b21 = prepped
    n, cin, h, w = from_up.shape
    _, cout, h2, w2 = from_down.shape

    xu = from_up.reshape(n, cin, h * w)          # free reshapes only
    xd = from_down.reshape(n, cout, h2 * w2)

    kernel = functools.partial(_upconv_kernel, H=h, W=w)
    out = pl.pallas_call(
        kernel,
        out_shape=jax.ShapeDtypeStruct((n, cout, h2 * w2), jnp.float32),
        in_specs=[_VMEM] * 9,
        out_specs=_VMEM,
    )(xu, xd, wt_k, bt1, w1u, w1d, b11, w2_k, b21)

    return out.reshape(n, cout, h2, w2)          # free reshape back to NCHW


# ----------------------------------------------------------------------------
# Pure-JAX (lax.conv) reference for correctness checking
# ----------------------------------------------------------------------------
def upconv_reference(from_down, from_up, params):
    wt, bt, w1, b1, w2, b2 = params
    # ConvTranspose2d(k=2, s=2, p=0) == dilated conv with flipped/swapped kernel
    wf = jnp.transpose(jnp.flip(wt, axis=(2, 3)), (1, 0, 2, 3))  # (Cout,Cin,2,2)
    up = lax.conv_general_dilated(
        from_up, wf, window_strides=(1, 1), padding=[(1, 1), (1, 1)],
        lhs_dilation=(2, 2), dimension_numbers=("NCHW", "OIHW", "NCHW"))
    up = up + bt[None, :, None, None]
    x = jnp.concatenate([up, from_down], axis=1)
    for wc, bc in ((w1, b1), (w2, b2)):
        x = lax.conv_general_dilated(
            x, wc, window_strides=(1, 1), padding=[(1, 1), (1, 1)],
            dimension_numbers=("NCHW", "OIHW", "NCHW"))
        x = jax.nn.relu(x + bc[None, :, None, None])
    return x


# ----------------------------------------------------------------------------
if __name__ == "__main__":
    # Small deterministic config: in_channels=8, out_channels=4
    N, Cin, Cout = 2, 8, 4
    H = W = 8                                   # from_up spatial (upsampled to 16x16)
    key = jax.random.PRNGKey(0)
    ks = jax.random.split(key, 8)

    from_up = jax.random.normal(ks[0], (N, Cin, H, W), jnp.float32)
    from_down = jax.random.normal(ks[1], (N, Cout, 2 * H, 2 * W), jnp.float32)

    # Parameters (PyTorch layouts), deterministic synthetic init
    wt = 0.1 * jax.random.normal(ks[2], (Cin, Cout, 2, 2), jnp.float32)   # ConvTranspose2d
    bt = 0.1 * jax.random.normal(ks[3], (Cout,), jnp.float32)
    w1 = 0.1 * jax.random.normal(ks[4], (Cout, 2 * Cout, 3, 3), jnp.float32)
    b1 = 0.1 * jax.random.normal(ks[5], (Cout,), jnp.float32)
    w2 = 0.1 * jax.random.normal(ks[6], (Cout, Cout, 3, 3), jnp.float32)
    b2 = 0.1 * jax.random.normal(ks[7], (Cout,), jnp.float32)
    params = (wt, bt, w1, b1, w2, b2)

    prepped = prepare_upconv_params(params)     # one-time weight re-layout
    out = jax.block_until_ready(upconv_forward(from_down, from_up, prepped))
    ref = jax.block_until_ready(upconv_reference(from_down, from_up, params))

    assert out.shape == (N, Cout, 2 * H, 2 * W), out.shape
    np.testing.assert_allclose(np.asarray(out), np.asarray(ref),
                               rtol=2e-3, atol=2e-3)
    print("KERNEL_OK")
</pallas_src>

<mosaic_0001>
module attributes {stable_mosaic.version = 11 : i64} {
  func.func @_upconv_kernel(%arg0: memref<2x8x64xf32, #tpu.memory_space<vmem>>, %arg1: memref<2x4x256xf32, #tpu.memory_space<vmem>>, %arg2: memref<4x4x8xf32, #tpu.memory_space<vmem>>, %arg3: memref<4x1xf32, #tpu.memory_space<vmem>>, %arg4: memref<9x4x4xf32, #tpu.memory_space<vmem>>, %arg5: memref<9x4x4xf32, #tpu.memory_space<vmem>>, %arg6: memref<4x1xf32, #tpu.memory_space<vmem>>, %arg7: memref<9x4x4xf32, #tpu.memory_space<vmem>>, %arg8: memref<4x1xf32, #tpu.memory_space<vmem>>, %arg9: memref<2x4x256xf32, #tpu.memory_space<vmem>>) attributes {dimension_semantics = [], scalar_prefetch = 0 : i64, scratch_operands = 0 : i64, tpu.core_type = #tpu.core_type<tc>} {
    %0 = tpu.iota {dimensions = array<i32: 1>} : vector<1x512xi32>
    %c15_i32 = arith.constant 15 : i32
    %1 = vector.broadcast %c15_i32 : i32 to vector<1x512xi32>
    %2 = arith.andi %0, %1 : vector<1x512xi32>
    %c4_i32 = arith.constant 4 : i32
    %3 = vector.broadcast %c4_i32 : i32 to vector<1x512xi32>
    %4 = arith.shrsi %0, %3 : vector<1x512xi32>
    %c15_i32_0 = arith.constant 15 : i32
    %5 = vector.broadcast %c15_i32_0 : i32 to vector<1x512xi32>
    %6 = arith.andi %4, %5 : vector<1x512xi32>
    %c1_i32 = arith.constant 1 : i32
    %7 = vector.broadcast %c1_i32 : i32 to vector<1x512xi32>
    %8 = arith.cmpi sge, %2, %7 : vector<1x512xi32>
    %c14_i32 = arith.constant 14 : i32
    %9 = vector.broadcast %c14_i32 : i32 to vector<1x512xi32>
    %10 = arith.cmpi sle, %2, %9 : vector<1x512xi32>
    %c1_i32_1 = arith.constant 1 : i32
    %11 = vector.broadcast %c1_i32_1 : i32 to vector<1x512xi32>
    %12 = arith.cmpi sge, %6, %11 : vector<1x512xi32>
    %c14_i32_2 = arith.constant 14 : i32
    %13 = vector.broadcast %c14_i32_2 : i32 to vector<1x512xi32>
    %14 = arith.cmpi sle, %6, %13 : vector<1x512xi32>
    %15 = tpu.iota {dimensions = array<i32: 0>} : vector<64x256xi32>
    %16 = tpu.iota {dimensions = array<i32: 1>} : vector<64x256xi32>
    %c3_i32 = arith.constant 3 : i32
    %17 = vector.broadcast %c3_i32 : i32 to vector<64x256xi32>
    %18 = arith.shrsi %15, %17 : vector<64x256xi32>
    %c7_i32 = arith.constant 7 : i32
    %19 = vector.broadcast %c7_i32 : i32 to vector<64x256xi32>
    %20 = arith.andi %15, %19 : vector<64x256xi32>
    %c2_i32 = arith.constant 2 : i32
    %21 = vector.broadcast %c2_i32 : i32 to vector<64x256xi32>
    %22 = arith.muli %21, %18 : vector<64x256xi32>
    %c16_i32 = arith.constant 16 : i32
    %23 = vector.broadcast %c16_i32 : i32 to vector<64x256xi32>
    %24 = arith.muli %22, %23 : vector<64x256xi32>
    %c2_i32_3 = arith.constant 2 : i32
    %25 = vector.broadcast %c2_i32_3 : i32 to vector<64x256xi32>
    %26 = arith.muli %25, %20 : vector<64x256xi32>
    %27 = arith.addi %24, %26 : vector<64x256xi32>
    %28 = arith.cmpi eq, %16, %27 : vector<64x256xi32>
    %cst = arith.constant 1.000000e+00 : f32
    %cst_4 = arith.constant 0.000000e+00 : f32
    %29 = vector.broadcast %cst : f32 to vector<64x256xf32>
    %30 = vector.broadcast %cst_4 : f32 to vector<64x256xf32>
    %31 = arith.select %28, %29, %30 : vector<64x256xi1>, vector<64x256xf32>
    %c0 = arith.constant 0 : index
    %c0_5 = arith.constant 0 : index
    %c0_6 = arith.constant 0 : index
    %32 = vector.load %arg0[%c0, %c0_5, %c0_6] : memref<2x8x64xf32, #tpu.memory_space<vmem>>, vector<1x8x64xf32>
    %33 = vector.shape_cast %32 : vector<1x8x64xf32> to vector<8x64xf32>
    %cst_7 = arith.constant dense<0.000000e+00> : vector<8x256xf32>
    %34 = tpu.matmul %33, %31, %cst_7 {dimension_numbers = #tpu.dot_dimension_numbers<[1], [0], [0], [1], [0, 0, 1, 1], [], []>} : vector<8x64xf32>, vector<64x256xf32>, vector<8x256xf32> -> vector<8x256xf32>
    %c1 = arith.constant 1 : index
    %c0_8 = arith.constant 0 : index
    %c0_9 = arith.constant 0 : index
    %35 = vector.load %arg0[%c1, %c0_8, %c0_9] : memref<2x8x64xf32, #tpu.memory_space<vmem>>, vector<1x8x64xf32>
    %36 = vector.shape_cast %35 : vector<1x8x64xf32> to vector<8x64xf32>
    %cst_10 = arith.constant dense<0.000000e+00> : vector<8x256xf32>
    %37 = tpu.matmul %36, %31, %cst_10 {dimension_numbers = #tpu.dot_dimension_numbers<[1], [0], [0], [1], [0, 0, 1, 1], [], []>} : vector<8x64xf32>, vector<64x256xf32>, vector<8x256xf32> -> vector<8x256xf32>
    %38 = tpu.concatenate %34, %37 in 1 : vector<8x256xf32>, vector<8x256xf32> -> vector<8x512xf32>
    %cst_11 = arith.constant 0.000000e+00 : f32
    %39 = vector.broadcast %cst_11 : f32 to vector<4x512xf32>
    %c0_12 = arith.constant 0 : index
    %c0_13 = arith.constant 0 : index
    %c0_14 = arith.constant 0 : index
    %40 = vector.load %arg2[%c0_12, %c0_13, %c0_14] : memref<4x4x8xf32, #tpu.memory_space<vmem>>, vector<1x4x8xf32>
    %41 = vector.shape_cast %40 : vector<1x4x8xf32> to vector<4x8xf32>
    %cst_15 = arith.constant dense<0.000000e+00> : vector<4x512xf32>
    %42 = tpu.matmul %41, %38, %cst_15 {dimension_numbers = #tpu.dot_dimension_numbers<[1], [0], [0], [1], [0, 0, 1, 1], [], []>} : vector<4x8xf32>, vector<8x512xf32>, vector<4x512xf32> -> vector<4x512xf32>
    %43 = arith.addf %39, %42 : vector<4x512xf32>
    %c1_16 = arith.constant 1 : index
    %c0_17 = arith.constant 0 : index
    %c0_18 = arith.constant 0 : index
    %44 = vector.load %arg2[%c1_16, %c0_17, %c0_18] : memref<4x4x8xf32, #tpu.memory_space<vmem>>, vector<1x4x8xf32>
    %45 = vector.shape_cast %44 : vector<1x4x8xf32> to vector<4x8xf32>
    %cst_19 = arith.constant dense<0.000000e+00> : vector<4x512xf32>
    %46 = tpu.matmul %45, %38, %cst_19 {dimension_numbers = #tpu.dot_dimension_numbers<[1], [0], [0], [1], [0, 0, 1, 1], [], []>} : vector<4x8xf32>, vector<8x512xf32>, vector<4x512xf32> -> vector<4x512xf32>
    %cst_20 = arith.constant 0.000000e+00 : f32
    %47 = vector.broadcast %cst_20 : f32 to vector<4x1xf32>
    %48 = vector.extract_strided_slice %46 {offsets = [0, 0], sizes = [4, 511], strides = [1, 1]} : vector<4x512xf32> to vector<4x511xf32>
    %49 = tpu.concatenate %47, %48 in 1 : vector<4x1xf32>, vector<4x511xf32> -> vector<4x512xf32>
    %50 = arith.addf %43, %49 : vector<4x512xf32>
    %c2 = arith.constant 2 : index
    %c0_21 = arith.constant 0 : index
    %c0_22 = arith.constant 0 : index
    %51 = vector.load %arg2[%c2, %c0_21, %c0_22] : memref<4x4x8xf32, #tpu.memory_space<vmem>>, vector<1x4x8xf32>
    %52 = vector.shape_cast %51 : vector<1x4x8xf32> to vector<4x8xf32>
    %cst_23 = arith.constant dense<0.000000e+00> : vector<4x512xf32>
    %53 = tpu.matmul %52, %38, %cst_23 {dimension_numbers = #tpu.dot_dimension_numbers<[1], [0], [0], [1], [0, 0, 1, 1], [], []>} : vector<4x8xf32>, vector<8x512xf32>, vector<4x512xf32> -> vector<4x512xf32>
    %cst_24 = arith.constant 0.000000e+00 : f32
    %54 = vector.broadcast %cst_24 : f32 to vector<4x16xf32>
    %55 = vector.extract_strided_slice %53 {offsets = [0, 0], sizes = [4, 496], strides = [1, 1]} : vector<4x512xf32> to vector<4x496xf32>
    %56 = tpu.concatenate %54, %55 in 1 : vector<4x16xf32>, vector<4x496xf32> -> vector<4x512xf32>
    %57 = arith.addf %50, %56 : vector<4x512xf32>
    %c3 = arith.constant 3 : index
    %c0_25 = arith.constant 0 : index
    %c0_26 = arith.constant 0 : index
    %58 = vector.load %arg2[%c3, %c0_25, %c0_26] : memref<4x4x8xf32, #tpu.memory_space<vmem>>, vector<1x4x8xf32>
    %59 = vector.shape_cast %58 : vector<1x4x8xf32> to vector<4x8xf32>
    %cst_27 = arith.constant dense<0.000000e+00> : vector<4x512xf32>
    %60 = tpu.matmul %59, %38, %cst_27 {dimension_numbers = #tpu.dot_dimension_numbers<[1], [0], [0], [1], [0, 0, 1, 1], [], []>} : vector<4x8xf32>, vector<8x512xf32>, vector<4x512xf32> -> vector<4x512xf32>
    %cst_28 = arith.constant 0.000000e+00 : f32
    %61 = vector.broadcast %cst_28 : f32 to vector<4x17xf32>
    %62 = vector.extract_strided_slice %60 {offsets = [0, 0], sizes = [4, 495], strides = [1, 1]} : vector<4x512xf32> to vector<4x495xf32>
    %63 = tpu.concatenate %61, %62 in 1 : vector<4x17xf32>, vector<4x495xf32> -> vector<4x512xf32>
    %64 = arith.addf %57, %63 : vector<4x512xf32>
    %c0_29 = arith.constant 0 : index
    %c0_30 = arith.constant 0 : index
    %65 = vector.load %arg3[%c0_29, %c0_30] : memref<4x1xf32, #tpu.memory_space<vmem>>, vector<4x1xf32>
    %66 = vector.broadcast %65 : vector<4x1xf32> to vector<4x512xf32>
    %67 = arith.addf %64, %66 : vector<4x512xf32>
    %c0_31 = arith.constant 0 : index
    %c0_32 = arith.constant 0 : index
    %c0_33 = arith.constant 0 : index
    %68 = vector.load %arg1[%c0_31, %c0_32, %c0_33] : memref<2x4x256xf32, #tpu.memory_space<vmem>>, vector<1x4x256xf32>
    %69 = vector.shape_cast %68 : vector<1x4x256xf32> to vector<4x256xf32>
    %c1_34 = arith.constant 1 : index
    %c0_35 = arith.constant 0 : index
    %c0_36 = arith.constant 0 : index
    %70 = vector.load %arg1[%c1_34, %c0_35, %c0_36] : memref<2x4x256xf32, #tpu.memory_space<vmem>>, vector<1x4x256xf32>
    %71 = vector.shape_cast %70 : vector<1x4x256xf32> to vector<4x256xf32>
    %72 = tpu.concatenate %69, %71 in 1 : vector<4x256xf32>, vector<4x256xf32> -> vector<4x512xf32>
    %cst_37 = arith.constant 0.000000e+00 : f32
    %73 = vector.broadcast %cst_37 : f32 to vector<4x512xf32>
    %c0_38 = arith.constant 0 : index
    %c0_39 = arith.constant 0 : index
    %c0_40 = arith.constant 0 : index
    %74 = vector.load %arg4[%c0_38, %c0_39, %c0_40] : memref<9x4x4xf32, #tpu.memory_space<vmem>>, vector<1x4x4xf32>
    %75 = vector.shape_cast %74 : vector<1x4x4xf32> to vector<4x4xf32>
    %cst_41 = arith.constant 0.000000e+00 : f32
    %76 = vector.broadcast %cst_41 : f32 to vector<4x17xf32>
    %77 = vector.extract_strided_slice %67 {offsets = [0, 0], sizes = [4, 495], strides = [1, 1]} : vector<4x512xf32> to vector<4x495xf32>
    %78 = tpu.concatenate %76, %77 in 1 : vector<4x17xf32>, vector<4x495xf32> -> vector<4x512xf32>
    %cst_42 = arith.constant 0.000000e+00 : f32
    %79 = vector.shape_cast %8 : vector<1x512xi1> to vector<1x512xi1>
    %80 = vector.broadcast %79 : vector<1x512xi1> to vector<4x512xi1>
    %81 = vector.broadcast %cst_42 : f32 to vector<4x512xf32>
    %82 = arith.select %80, %78, %81 : vector<4x512xi1>, vector<4x512xf32>
    %cst_43 = arith.constant 0.000000e+00 : f32
    %83 = vector.shape_cast %12 : vector<1x512xi1> to vector<1x512xi1>
    %84 = vector.broadcast %83 : vector<1x512xi1> to vector<4x512xi1>
    %85 = vector.broadcast %cst_43 : f32 to vector<4x512xf32>
    %86 = arith.select %84, %82, %85 : vector<4x512xi1>, vector<4x512xf32>
    %cst_44 = arith.constant dense<0.000000e+00> : vector<4x512xf32>
    %87 = tpu.matmul %75, %86, %cst_44 {dimension_numbers = #tpu.dot_dimension_numbers<[1], [0], [0], [1], [0, 0, 1, 1], [], []>} : vector<4x4xf32>, vector<4x512xf32>, vector<4x512xf32> -> vector<4x512xf32>
    %88 = arith.addf %73, %87 : vector<4x512xf32>
    %c0_45 = arith.constant 0 : index
    %c0_46 = arith.constant 0 : index
    %c0_47 = arith.constant 0 : index
    %89 = vector.load %arg5[%c0_45, %c0_46, %c0_47] : memref<9x4x4xf32, #tpu.memory_space<vmem>>, vector<1x4x4xf32>
    %90 = vector.shape_cast %89 : vector<1x4x4xf32> to vector<4x4xf32>
    %cst_48 = arith.constant 0.000000e+00 : f32
    %91 = vector.broadcast %cst_48 : f32 to vector<4x17xf32>
    %92 = vector.extract_strided_slice %72 {offsets = [0, 0], sizes = [4, 495], strides = [1, 1]} : vector<4x512xf32> to vector<4x495xf32>
    %93 = tpu.concatenate %91, %92 in 1 : vector<4x17xf32>, vector<4x495xf32> -> vector<4x512xf32>
    %cst_49 = arith.constant 0.000000e+00 : f32
    %94 = vector.shape_cast %8 : vector<1x512xi1> to vector<1x512xi1>
    %95 = vector.broadcast %94 : vector<1x512xi1> to vector<4x512xi1>
    %96 = vector.broadcast %cst_49 : f32 to vector<4x512xf32>
    %97 = arith.select %95, %93, %96 : vector<4x512xi1>, vector<4x512xf32>
    %cst_50 = arith.constant 0.000000e+00 : f32
    %98 = vector.shape_cast %12 : vector<1x512xi1> to vector<1x512xi1>
    %99 = vector.broadcast %98 : vector<1x512xi1> to vector<4x512xi1>
    %100 = vector.broadcast %cst_50 : f32 to vector<4x512xf32>
    %101 = arith.select %99, %97, %100 : vector<4x512xi1>, vector<4x512xf32>
    %cst_51 = arith.constant dense<0.000000e+00> : vector<4x512xf32>
    %102 = tpu.matmul %90, %101, %cst_51 {dimension_numbers = #tpu.dot_dimension_numbers<[1], [0], [0], [1], [0, 0, 1, 1], [], []>} : vector<4x4xf32>, vector<4x512xf32>, vector<4x512xf32> -> vector<4x512xf32>
    %103 = arith.addf %88, %102 : vector<4x512xf32>
    %c1_52 = arith.constant 1 : index
    %c0_53 = arith.constant 0 : index
    %c0_54 = arith.constant 0 : index
    %104 = vector.load %arg4[%c1_52, %c0_53, %c0_54] : memref<9x4x4xf32, #tpu.memory_space<vmem>>, vector<1x4x4xf32>
    %105 = vector.shape_cast %104 : vector<1x4x4xf32> to vector<4x4xf32>
    %cst_55 = arith.constant 0.000000e+00 : f32
    %106 = vector.broadcast %cst_55 : f32 to vector<4x16xf32>
    %107 = vector.extract_strided_slice %67 {offsets = [0, 0], sizes = [4, 496], strides = [1, 1]} : vector<4x512xf32> to vector<4x496xf32>
    %108 = tpu.concatenate %106, %107 in 1 : vector<4x16xf32>, vector<4x496xf32> -> vector<4x512xf32>
    %cst_56 = arith.constant 0.000000e+00 : f32
    %109 = vector.shape_cast %12 : vector<1x512xi1> to vector<1x512xi1>
    %110 = vector.broadcast %109 : vector<1x512xi1> to vector<4x512xi1>
    %111 = vector.broadcast %cst_56 : f32 to vector<4x512xf32>
    %112 = arith.select %110, %108, %111 : vector<4x512xi1>, vector<4x512xf32>
    %cst_57 = arith.constant dense<0.000000e+00> : vector<4x512xf32>
    %113 = tpu.matmul %105, %112, %cst_57 {dimension_numbers = #tpu.dot_dimension_numbers<[1], [0], [0], [1], [0, 0, 1, 1], [], []>} : vector<4x4xf32>, vector<4x512xf32>, vector<4x512xf32> -> vector<4x512xf32>
    %114 = arith.addf %103, %113 : vector<4x512xf32>
    %c1_58 = arith.constant 1 : index
    %c0_59 = arith.constant 0 : index
    %c0_60 = arith.constant 0 : index
    %115 = vector.load %arg5[%c1_58, %c0_59, %c0_60] : memref<9x4x4xf32, #tpu.memory_space<vmem>>, vector<1x4x4xf32>
    %116 = vector.shape_cast %115 : vector<1x4x4xf32> to vector<4x4xf32>
    %cst_61 = arith.constant 0.000000e+00 : f32
    %117 = vector.broadcast %cst_61 : f32 to vector<4x16xf32>
    %118 = vector.extract_strided_slice %72 {offsets = [0, 0], sizes = [4, 496], strides = [1, 1]} : vector<4x512xf32> to vector<4x496xf32>
    %119 = tpu.concatenate %117, %118 in 1 : vector<4x16xf32>, vector<4x496xf32> -> vector<4x512xf32>
    %cst_62 = arith.constant 0.000000e+00 : f32
    %120 = vector.shape_cast %12 : vector<1x512xi1> to vector<1x512xi1>
    %121 = vector.broadcast %120 : vector<1x512xi1> to vector<4x512xi1>
    %122 = vector.broadcast %cst_62 : f32 to vector<4x512xf32>
    %123 = arith.select %121, %119, %122 : vector<4x512xi1>, vector<4x512xf32>
    %cst_63 = arith.constant dense<0.000000e+00> : vector<4x512xf32>
    %124 = tpu.matmul %116, %123, %cst_63 {dimension_numbers = #tpu.dot_dimension_numbers<[1], [0], [0], [1], [0, 0, 1, 1], [], []>} : vector<4x4xf32>, vector<4x512xf32>, vector<4x512xf32> -> vector<4x512xf32>
    %125 = arith.addf %114, %124 : vector<4x512xf32>
    %c2_64 = arith.constant 2 : index
    %c0_65 = arith.constant 0 : index
    %c0_66 = arith.constant 0 : index
    %126 = vector.load %arg4[%c2_64, %c0_65, %c0_66] : memref<9x4x4xf32, #tpu.memory_space<vmem>>, vector<1x4x4xf32>
    %127 = vector.shape_cast %126 : vector<1x4x4xf32> to vector<4x4xf32>
    %cst_67 = arith.constant 0.000000e+00 : f32
    %128 = vector.broadcast %cst_67 : f32 to vector<4x15xf32>
    %129 = vector.extract_strided_slice %67 {offsets = [0, 0], sizes = [4, 497], strides = [1, 1]} : vector<4x512xf32> to vector<4x497xf32>
    %130 = tpu.concatenate %128, %129 in 1 : vector<4x15xf32>, vector<4x497xf32> -> vector<4x512xf32>
    %cst_68 = arith.constant 0.000000e+00 : f32
    %131 = vector.shape_cast %10 : vector<1x512xi1> to vector<1x512xi1>
    %132 = vector.broadcast %131 : vector<1x512xi1> to vector<4x512xi1>
    %133 = vector.broadcast %cst_68 : f32 to vector<4x512xf32>
    %134 = arith.select %132, %130, %133 : vector<4x512xi1>, vector<4x512xf32>
    %cst_69 = arith.constant 0.000000e+00 : f32
    %135 = vector.shape_cast %12 : vector<1x512xi1> to vector<1x512xi1>
    %136 = vector.broadcast %135 : vector<1x512xi1> to vector<4x512xi1>
    %137 = vector.broadcast %cst_69 : f32 to vector<4x512xf32>
    %138 = arith.select %136, %134, %137 : vector<4x512xi1>, vector<4x512xf32>
    %cst_70 = arith.constant dense<0.000000e+00> : vector<4x512xf32>
    %139 = tpu.matmul %127, %138, %cst_70 {dimension_numbers = #tpu.dot_dimension_numbers<[1], [0], [0], [1], [0, 0, 1, 1], [], []>} : vector<4x4xf32>, vector<4x512xf32>, vector<4x512xf32> -> vector<4x512xf32>
    %140 = arith.addf %125, %139 : vector<4x512xf32>
    %c2_71 = arith.constant 2 : index
    %c0_72 = arith.constant 0 : index
    %c0_73 = arith.constant 0 : index
    %141 = vector.load %arg5[%c2_71, %c0_72, %c0_73] : memref<9x4x4xf32, #tpu.memory_space<vmem>>, vector<1x4x4xf32>
    %142 = vector.shape_cast %141 : vector<1x4x4xf32> to vector<4x4xf32>
    %cst_74 = arith.constant 0.000000e+00 : f32
    %143 = vector.broadcast %cst_74 : f32 to vector<4x15xf32>
    %144 = vector.extract_strided_slice %72 {offsets = [0, 0], sizes = [4, 497], strides = [1, 1]} : vector<4x512xf32> to vector<4x497xf32>
    %145 = tpu.concatenate %143, %144 in 1 : vector<4x15xf32>, vector<4x497xf32> -> vector<4x512xf32>
    %cst_75 = arith.constant 0.000000e+00 : f32
    %146 = vector.shape_cast %10 : vector<1x512xi1> to vector<1x512xi1>
    %147 = vector.broadcast %146 : vector<1x512xi1> to vector<4x512xi1>
    %148 = vector.broadcast %cst_75 : f32 to vector<4x512xf32>
    %149 = arith.select %147, %145, %148 : vector<4x512xi1>, vector<4x512xf32>
    %cst_76 = arith.constant 0.000000e+00 : f32
    %150 = vector.shape_cast %12 : vector<1x512xi1> to vector<1x512xi1>
    %151 = vector.broadcast %150 : vector<1x512xi1> to vector<4x512xi1>
    %152 = vector.broadcast %cst_76 : f32 to vector<4x512xf32>
    %153 = arith.select %151, %149, %152 : vector<4x512xi1>, vector<4x512xf32>
    %cst_77 = arith.constant dense<0.000000e+00> : vector<4x512xf32>
    %154 = tpu.matmul %142, %153, %cst_77 {dimension_numbers = #tpu.dot_dimension_numbers<[1], [0], [0], [1], [0, 0, 1, 1], [], []>} : vector<4x4xf32>, vector<4x512xf32>, vector<4x512xf32> -> vector<4x512xf32>
    %155 = arith.addf %140, %154 : vector<4x512xf32>
    %c3_78 = arith.constant 3 : index
    %c0_79 = arith.constant 0 : index
    %c0_80 = arith.constant 0 : index
    %156 = vector.load %arg4[%c3_78, %c0_79, %c0_80] : memref<9x4x4xf32, #tpu.memory_space<vmem>>, vector<1x4x4xf32>
    %157 = vector.shape_cast %156 : vector<1x4x4xf32> to vector<4x4xf32>
    %cst_81 = arith.constant 0.000000e+00 : f32
    %158 = vector.broadcast %cst_81 : f32 to vector<4x1xf32>
    %159 = vector.extract_strided_slice %67 {offsets = [0, 0], sizes = [4, 511], strides = [1, 1]} : vector<4x512xf32> to vector<4x511xf32>
    %160 = tpu.concatenate %158, %159 in 1 : vector<4x1xf32>, vector<4x511xf32> -> vector<4x512xf32>
    %cst_82 = arith.constant 0.000000e+00 : f32
    %161 = vector.shape_cast %8 : vector<1x512xi1> to vector<1x512xi1>
    %162 = vector.broadcast %161 : vector<1x512xi1> to vector<4x512xi1>
    %163 = vector.broadcast %cst_82 : f32 to vector<4x512xf32>
    %164 = arith.select %162, %160, %163 : vector<4x512xi1>, vector<4x512xf32>
    %cst_83 = arith.constant dense<0.000000e+00> : vector<4x512xf32>
    %165 = tpu.matmul %157, %164, %cst_83 {dimension_numbers = #tpu.dot_dimension_numbers<[1], [0], [0], [1], [0, 0, 1, 1], [], []>} : vector<4x4xf32>, vector<4x512xf32>, vector<4x512xf32> -> vector<4x512xf32>
    %166 = arith.addf %155, %165 : vector<4x512xf32>
    %c3_84 = arith.constant 3 : index
    %c0_85 = arith.constant 0 : index
    %c0_86 = arith.constant 0 : index
    %167 = vector.load %arg5[%c3_84, %c0_85, %c0_86] : memref<9x4x4xf32, #tpu.memory_space<vmem>>, vector<1x4x4xf32>
    %168 = vector.shape_cast %167 : vector<1x4x4xf32> to vector<4x4xf32>
    %cst_87 = arith.constant 0.000000e+00 : f32
    %169 = vector.broadcast %cst_87 : f32 to vector<4x1xf32>
    %170 = vector.extract_strided_slice %72 {offsets = [0, 0], sizes = [4, 511], strides = [1, 1]} : vector<4x512xf32> to vector<4x511xf32>
    %171 = tpu.concatenate %169, %170 in 1 : vector<4x1xf32>, vector<4x511xf32> -> vector<4x512xf32>
    %cst_88 = arith.constant 0.000000e+00 : f32
    %172 = vector.shape_cast %8 : vector<1x512xi1> to vector<1x512xi1>
    %173 = vector.broadcast %172 : vector<1x512xi1> to vector<4x512xi1>
    %174 = vector.broadcast %cst_88 : f32 to vector<4x512xf32>
    %175 = arith.select %173, %171, %174 : vector<4x512xi1>, vector<4x512xf32>
    %cst_89 = arith.constant dense<0.000000e+00> : vector<4x512xf32>
    %176 = tpu.matmul %168, %175, %cst_89 {dimension_numbers = #tpu.dot_dimension_numbers<[1], [0], [0], [1], [0, 0, 1, 1], [], []>} : vector<4x4xf32>, vector<4x512xf32>, vector<4x512xf32> -> vector<4x512xf32>
    %177 = arith.addf %166, %176 : vector<4x512xf32>
    %c4 = arith.constant 4 : index
    %c0_90 = arith.constant 0 : index
    %c0_91 = arith.constant 0 : index
    %178 = vector.load %arg4[%c4, %c0_90, %c0_91] : memref<9x4x4xf32, #tpu.memory_space<vmem>>, vector<1x4x4xf32>
    %179 = vector.shape_cast %178 : vector<1x4x4xf32> to vector<4x4xf32>
    %cst_92 = arith.constant dense<0.000000e+00> : vector<4x512xf32>
    %180 = tpu.matmul %179, %67, %cst_92 {dimension_numbers = #tpu.dot_dimension_numbers<[1], [0], [0], [1], [0, 0, 1, 1], [], []>} : vector<4x4xf32>, vector<4x512xf32>, vector<4x512xf32> -> vector<4x512xf32>
    %181 = arith.addf %177, %180 : vector<4x512xf32>
    %c4_93 = arith.constant 4 : index
    %c0_94 = arith.constant 0 : index
    %c0_95 = arith.constant 0 : index
    %182 = vector.load %arg5[%c4_93, %c0_94, %c0_95] : memref<9x4x4xf32, #tpu.memory_space<vmem>>, vector<1x4x4xf32>
    %183 = vector.shape_cast %182 : vector<1x4x4xf32> to vector<4x4xf32>
    %cst_96 = arith.constant dense<0.000000e+00> : vector<4x512xf32>
    %184 = tpu.matmul %183, %72, %cst_96 {dimension_numbers = #tpu.dot_dimension_numbers<[1], [0], [0], [1], [0, 0, 1, 1], [], []>} : vector<4x4xf32>, vector<4x512xf32>, vector<4x512xf32> -> vector<4x512xf32>
    %185 = arith.addf %181, %184 : vector<4x512xf32>
    %c5 = arith.constant 5 : index
    %c0_97 = arith.constant 0 : index
    %c0_98 = arith.constant 0 : index
    %186 = vector.load %arg4[%c5, %c0_97, %c0_98] : memref<9x4x4xf32, #tpu.memory_space<vmem>>, vector<1x4x4xf32>
    %187 = vector.shape_cast %186 : vector<1x4x4xf32> to vector<4x4xf32>
    %cst_99 = arith.constant 0.000000e+00 : f32
    %188 = vector.broadcast %cst_99 : f32 to vector<4x1xf32>
    %189 = vector.extract_strided_slice %67 {offsets = [0, 1], sizes = [4, 511], strides = [1, 1]} : vector<4x512xf32> to vector<4x511xf32>
    %190 = tpu.concatenate %189, %188 in 1 : vector<4x511xf32>, vector<4x1xf32> -> vector<4x512xf32>
    %cst_100 = arith.constant 0.000000e+00 : f32
    %191 = vector.shape_cast %10 : vector<1x512xi1> to vector<1x512xi1>
    %192 = vector.broadcast %191 : vector<1x512xi1> to vector<4x512xi1>
    %193 = vector.broadcast %cst_100 : f32 to vector<4x512xf32>
    %194 = arith.select %192, %190, %193 : vector<4x512xi1>, vector<4x512xf32>
    %cst_101 = arith.constant dense<0.000000e+00> : vector<4x512xf32>
    %195 = tpu.matmul %187, %194, %cst_101 {dimension_numbers = #tpu.dot_dimension_numbers<[1], [0], [0], [1], [0, 0, 1, 1], [], []>} : vector<4x4xf32>, vector<4x512xf32>, vector<4x512xf32> -> vector<4x512xf32>
    %196 = arith.addf %185, %195 : vector<4x512xf32>
    %c5_102 = arith.constant 5 : index
    %c0_103 = arith.constant 0 : index
    %c0_104 = arith.constant 0 : index
    %197 = vector.load %arg5[%c5_102, %c0_103, %c0_104] : memref<9x4x4xf32, #tpu.memory_space<vmem>>, vector<1x4x4xf32>
    %198 = vector.shape_cast %197 : vector<1x4x4xf32> to vector<4x4xf32>
    %cst_105 = arith.constant 0.000000e+00 : f32
    %199 = vector.broadcast %cst_105 : f32 to vector<4x1xf32>
    %200 = vector.extract_strided_slice %72 {offsets = [0, 1], sizes = [4, 511], strides = [1, 1]} : vector<4x512xf32> to vector<4x511xf32>
    %201 = tpu.concatenate %200, %199 in 1 : vector<4x511xf32>, vector<4x1xf32> -> vector<4x512xf32>
    %cst_106 = arith.constant 0.000000e+00 : f32
    %202 = vector.shape_cast %10 : vector<1x512xi1> to vector<1x512xi1>
    %203 = vector.broadcast %202 : vector<1x512xi1> to vector<4x512xi1>
    %204 = vector.broadcast %cst_106 : f32 to vector<4x512xf32>
    %205 = arith.select %203, %201, %204 : vector<4x512xi1>, vector<4x512xf32>
    %cst_107 = arith.constant dense<0.000000e+00> : vector<4x512xf32>
    %206 = tpu.matmul %198, %205, %cst_107 {dimension_numbers = #tpu.dot_dimension_numbers<[1], [0], [0], [1], [0, 0, 1, 1], [], []>} : vector<4x4xf32>, vector<4x512xf32>, vector<4x512xf32> -> vector<4x512xf32>
    %207 = arith.addf %196, %206 : vector<4x512xf32>
    %c6 = arith.constant 6 : index
    %c0_108 = arith.constant 0 : index
    %c0_109 = arith.constant 0 : index
    %208 = vector.load %arg4[%c6, %c0_108, %c0_109] : memref<9x4x4xf32, #tpu.memory_space<vmem>>, vector<1x4x4xf32>
    %209 = vector.shape_cast %208 : vector<1x4x4xf32> to vector<4x4xf32>
    %cst_110 = arith.constant 0.000000e+00 : f32
    %210 = vector.broadcast %cst_110 : f32 to vector<4x15xf32>
    %211 = vector.extract_strided_slice %67 {offsets = [0, 15], sizes = [4, 497], strides = [1, 1]} : vector<4x512xf32> to vector<4x497xf32>
    %212 = tpu.concatenate %211, %210 in 1 : vector<4x497xf32>, vector<4x15xf32> -> vector<4x512xf32>
    %cst_111 = arith.constant 0.000000e+00 : f32
    %213 = vector.shape_cast %8 : vector<1x512xi1> to vector<1x512xi1>
    %214 = vector.broadcast %213 : vector<1x512xi1> to vector<4x512xi1>
    %215 = vector.broadcast %cst_111 : f32 to vector<4x512xf32>
    %216 = arith.select %214, %212, %215 : vector<4x512xi1>, vector<4x512xf32>
    %cst_112 = arith.constant 0.000000e+00 : f32
    %217 = vector.shape_cast %14 : vector<1x512xi1> to vector<1x512xi1>
    %218 = vector.broadcast %217 : vector<1x512xi1> to vector<4x512xi1>
    %219 = vector.broadcast %cst_112 : f32 to vector<4x512xf32>
    %220 = arith.select %218, %216, %219 : vector<4x512xi1>, vector<4x512xf32>
    %cst_113 = arith.constant dense<0.000000e+00> : vector<4x512xf32>
    %221 = tpu.matmul %209, %220, %cst_113 {dimension_numbers = #tpu.dot_dimension_numbers<[1], [0], [0], [1], [0, 0, 1, 1], [], []>} : vector<4x4xf32>, vector<4x512xf32>, vector<4x512xf32> -> vector<4x512xf32>
    %222 = arith.addf %207, %221 : vector<4x512xf32>
    %c6_114 = arith.constant 6 : index
    %c0_115 = arith.constant 0 : index
    %c0_116 = arith.constant 0 : index
    %223 = vector.load %arg5[%c6_114, %c0_115, %c0_116] : memref<9x4x4xf32, #tpu.memory_space<vmem>>, vector<1x4x4xf32>
    %224 = vector.shape_cast %223 : vector<1x4x4xf32> to vector<4x4xf32>
    %cst_117 = arith.constant 0.000000e+00 : f32
    %225 = vector.broadcast %cst_117 : f32 to vector<4x15xf32>
    %226 = vector.extract_strided_slice %72 {offsets = [0, 15], sizes = [4, 497], strides = [1, 1]} : vector<4x512xf32> to vector<4x497xf32>
    %227 = tpu.concatenate %226, %225 in 1 : vector<4x497xf32>, vector<4x15xf32> -> vector<4x512xf32>
    %cst_118 = arith.constant 0.000000e+00 : f32
    %228 = vector.shape_cast %8 : vector<1x512xi1> to vector<1x512xi1>
    %229 = vector.broadcast %228 : vector<1x512xi1> to vector<4x512xi1>
    %230 = vector.broadcast %cst_118 : f32 to vector<4x512xf32>
    %231 = arith.select %229, %227, %230 : vector<4x512xi1>, vector<4x512xf32>
    %cst_119 = arith.constant 0.000000e+00 : f32
    %232 = vector.shape_cast %14 : vector<1x512xi1> to vector<1x512xi1>
    %233 = vector.broadcast %232 : vector<1x512xi1> to vector<4x512xi1>
    %234 = vector.broadcast %cst_119 : f32 to vector<4x512xf32>
    %235 = arith.select %233, %231, %234 : vector<4x512xi1>, vector<4x512xf32>
    %cst_120 = arith.constant dense<0.000000e+00> : vector<4x512xf32>
    %236 = tpu.matmul %224, %235, %cst_120 {dimension_numbers = #tpu.dot_dimension_numbers<[1], [0], [0], [1], [0, 0, 1, 1], [], []>} : vector<4x4xf32>, vector<4x512xf32>, vector<4x512xf32> -> vector<4x512xf32>
    %237 = arith.addf %222, %236 : vector<4x512xf32>
    %c7 = arith.constant 7 : index
    %c0_121 = arith.constant 0 : index
    %c0_122 = arith.constant 0 : index
    %238 = vector.load %arg4[%c7, %c0_121, %c0_122] : memref<9x4x4xf32, #tpu.memory_space<vmem>>, vector<1x4x4xf32>
    %239 = vector.shape_cast %238 : vector<1x4x4xf32> to vector<4x4xf32>
    %cst_123 = arith.constant 0.000000e+00 : f32
    %240 = vector.broadcast %cst_123 : f32 to vector<4x16xf32>
    %241 = vector.extract_strided_slice %67 {offsets = [0, 16], sizes = [4, 496], strides = [1, 1]} : vector<4x512xf32> to vector<4x496xf32>
    %242 = tpu.concatenate %241, %240 in 1 : vector<4x496xf32>, vector<4x16xf32> -> vector<4x512xf32>
    %cst_124 = arith.constant 0.000000e+00 : f32
    %243 = vector.shape_cast %14 : vector<1x512xi1> to vector<1x512xi1>
    %244 = vector.broadcast %243 : vector<1x512xi1> to vector<4x512xi1>
    %245 = vector.broadcast %cst_124 : f32 to vector<4x512xf32>
    %246 = arith.select %244, %242, %245 : vector<4x512xi1>, vector<4x512xf32>
    %cst_125 = arith.constant dense<0.000000e+00> : vector<4x512xf32>
    %247 = tpu.matmul %239, %246, %cst_125 {dimension_numbers = #tpu.dot_dimension_numbers<[1], [0], [0], [1], [0, 0, 1, 1], [], []>} : vector<4x4xf32>, vector<4x512xf32>, vector<4x512xf32> -> vector<4x512xf32>
    %248 = arith.addf %237, %247 : vector<4x512xf32>
    %c7_126 = arith.constant 7 : index
    %c0_127 = arith.constant 0 : index
    %c0_128 = arith.constant 0 : index
    %249 = vector.load %arg5[%c7_126, %c0_127, %c0_128] : memref<9x4x4xf32, #tpu.memory_space<vmem>>, vector<1x4x4xf32>
    %250 = vector.shape_cast %249 : vector<1x4x4xf32> to vector<4x4xf32>
    %cst_129 = arith.constant 0.000000e+00 : f32
    %251 = vector.broadcast %cst_129 : f32 to vector<4x16xf32>
    %252 = vector.extract_strided_slice %72 {offsets = [0, 16], sizes = [4, 496], strides = [1, 1]} : vector<4x512xf32> to vector<4x496xf32>
    %253 = tpu.concatenate %252, %251 in 1 : vector<4x496xf32>, vector<4x16xf32> -> vector<4x512xf32>
    %cst_130 = arith.constant 0.000000e+00 : f32
    %254 = vector.shape_cast %14 : vector<1x512xi1> to vector<1x512xi1>
    %255 = vector.broadcast %254 : vector<1x512xi1> to vector<4x512xi1>
    %256 = vector.broadcast %cst_130 : f32 to vector<4x512xf32>
    %257 = arith.select %255, %253, %256 : vector<4x512xi1>, vector<4x512xf32>
    %cst_131 = arith.constant dense<0.000000e+00> : vector<4x512xf32>
    %258 = tpu.matmul %250, %257, %cst_131 {dimension_numbers = #tpu.dot_dimension_numbers<[1], [0], [0], [1], [0, 0, 1, 1], [], []>} : vector<4x4xf32>, vector<4x512xf32>, vector<4x512xf32> -> vector<4x512xf32>
    %259 = arith.addf %248, %258 : vector<4x512xf32>
    %c8 = arith.constant 8 : index
    %c0_132 = arith.constant 0 : index
    %c0_133 = arith.constant 0 : index
    %260 = vector.load %arg4[%c8, %c0_132, %c0_133] : memref<9x4x4xf32, #tpu.memory_space<vmem>>, vector<1x4x4xf32>
    %261 = vector.shape_cast %260 : vector<1x4x4xf32> to vector<4x4xf32>
    %cst_134 = arith.constant 0.000000e+00 : f32
    %262 = vector.broadcast %cst_134 : f32 to vector<4x17xf32>
    %263 = vector.extract_strided_slice %67 {offsets = [0, 17], sizes = [4, 495], strides = [1, 1]} : vector<4x512xf32> to vector<4x495xf32>
    %264 = tpu.concatenate %263, %262 in 1 : vector<4x495xf32>, vector<4x17xf32> -> vector<4x512xf32>
    %cst_135 = arith.constant 0.000000e+00 : f32
    %265 = vector.shape_cast %10 : vector<1x512xi1> to vector<1x512xi1>
    %266 = vector.broadcast %265 : vector<1x512xi1> to vector<4x512xi1>
    %267 = vector.broadcast %cst_135 : f32 to vector<4x512xf32>
    %268 = arith.select %266, %264, %267 : vector<4x512xi1>, vector<4x512xf32>
    %cst_136 = arith.constant 0.000000e+00 : f32
    %269 = vector.shape_cast %14 : vector<1x512xi1> to vector<1x512xi1>
    %270 = vector.broadcast %269 : vector<1x512xi1> to vector<4x512xi1>
    %271 = vector.broadcast %cst_136 : f32 to vector<4x512xf32>
    %272 = arith.select %270, %268, %271 : vector<4x512xi1>, vector<4x512xf32>
    %cst_137 = arith.constant dense<0.000000e+00> : vector<4x512xf32>
    %273 = tpu.matmul %261, %272, %cst_137 {dimension_numbers = #tpu.dot_dimension_numbers<[1], [0], [0], [1], [0, 0, 1, 1], [], []>} : vector<4x4xf32>, vector<4x512xf32>, vector<4x512xf32> -> vector<4x512xf32>
    %274 = arith.addf %259, %273 : vector<4x512xf32>
    %c8_138 = arith.constant 8 : index
    %c0_139 = arith.constant 0 : index
    %c0_140 = arith.constant 0 : index
    %275 = vector.load %arg5[%c8_138, %c0_139, %c0_140] : memref<9x4x4xf32, #tpu.memory_space<vmem>>, vector<1x4x4xf32>
    %276 = vector.shape_cast %275 : vector<1x4x4xf32> to vector<4x4xf32>
    %cst_141 = arith.constant 0.000000e+00 : f32
    %277 = vector.broadcast %cst_141 : f32 to vector<4x17xf32>
    %278 = vector.extract_strided_slice %72 {offsets = [0, 17], sizes = [4, 495], strides = [1, 1]} : vector<4x512xf32> to vector<4x495xf32>
    %279 = tpu.concatenate %278, %277 in 1 : vector<4x495xf32>, vector<4x17xf32> -> vector<4x512xf32>
    %cst_142 = arith.constant 0.000000e+00 : f32
    %280 = vector.shape_cast %10 : vector<1x512xi1> to vector<1x512xi1>
    %281 = vector.broadcast %280 : vector<1x512xi1> to vector<4x512xi1>
    %282 = vector.broadcast %cst_142 : f32 to vector<4x512xf32>
    %283 = arith.select %281, %279, %282 : vector<4x512xi1>, vector<4x512xf32>
    %cst_143 = arith.constant 0.000000e+00 : f32
    %284 = vector.shape_cast %14 : vector<1x512xi1> to vector<1x512xi1>
    %285 = vector.broadcast %284 : vector<1x512xi1> to vector<4x512xi1>
    %286 = vector.broadcast %cst_143 : f32 to vector<4x512xf32>
    %287 = arith.select %285, %283, %286 : vector<4x512xi1>, vector<4x512xf32>
    %cst_144 = arith.constant dense<0.000000e+00> : vector<4x512xf32>
    %288 = tpu.matmul %276, %287, %cst_144 {dimension_numbers = #tpu.dot_dimension_numbers<[1], [0], [0], [1], [0, 0, 1, 1], [], []>} : vector<4x4xf32>, vector<4x512xf32>, vector<4x512xf32> -> vector<4x512xf32>
    %289 = arith.addf %274, %288 : vector<4x512xf32>
    %c0_145 = arith.constant 0 : index
    %c0_146 = arith.constant 0 : index
    %290 = vector.load %arg6[%c0_145, %c0_146] : memref<4x1xf32, #tpu.memory_space<vmem>>, vector<4x1xf32>
    %291 = vector.broadcast %290 : vector<4x1xf32> to vector<4x512xf32>
    %292 = arith.addf %289, %291 : vector<4x512xf32>
    %cst_147 = arith.constant 0.000000e+00 : f32
    %293 = vector.broadcast %cst_147 : f32 to vector<4x512xf32>
    %294 = arith.maximumf %292, %293 : vector<4x512xf32>
    %cst_148 = arith.constant 0.000000e+00 : f32
    %295 = vector.broadcast %cst_148 : f32 to vector<4x512xf32>
    %c0_149 = arith.constant 0 : index
    %c0_150 = arith.constant 0 : index
    %c0_151 = arith.constant 0 : index
    %296 = vector.load %arg7[%c0_149, %c0_150, %c0_151] : memref<9x4x4xf32, #tpu.memory_space<vmem>>, vector<1x4x4xf32>
    %297 = vector.shape_cast %296 : vector<1x4x4xf32> to vector<4x4xf32>
    %cst_152 = arith.constant 0.000000e+00 : f32
    %298 = vector.broadcast %cst_152 : f32 to vector<4x17xf32>
    %299 = vector.extract_strided_slice %294 {offsets = [0, 0], sizes = [4, 495], strides = [1, 1]} : vector<4x512xf32> to vector<4x495xf32>
    %300 = tpu.concatenate %298, %299 in 1 : vector<4x17xf32>, vector<4x495xf32> -> vector<4x512xf32>
    %cst_153 = arith.constant 0.000000e+00 : f32
    %301 = vector.shape_cast %8 : vector<1x512xi1> to vector<1x512xi1>
    %302 = vector.broadcast %301 : vector<1x512xi1> to vector<4x512xi1>
    %303 = vector.broadcast %cst_153 : f32 to vector<4x512xf32>
    %304 = arith.select %302, %300, %303 : vector<4x512xi1>, vector<4x512xf32>
    %cst_154 = arith.constant 0.000000e+00 : f32
    %305 = vector.shape_cast %12 : vector<1x512xi1> to vector<1x512xi1>
    %306 = vector.broadcast %305 : vector<1x512xi1> to vector<4x512xi1>
    %307 = vector.broadcast %cst_154 : f32 to vector<4x512xf32>
    %308 = arith.select %306, %304, %307 : vector<4x512xi1>, vector<4x512xf32>
    %cst_155 = arith.constant dense<0.000000e+00> : vector<4x512xf32>
    %309 = tpu.matmul %297, %308, %cst_155 {dimension_numbers = #tpu.dot_dimension_numbers<[1], [0], [0], [1], [0, 0, 1, 1], [], []>} : vector<4x4xf32>, vector<4x512xf32>, vector<4x512xf32> -> vector<4x512xf32>
    %310 = arith.addf %295, %309 : vector<4x512xf32>
    %c1_156 = arith.constant 1 : index
    %c0_157 = arith.constant 0 : index
    %c0_158 = arith.constant 0 : index
    %311 = vector.load %arg7[%c1_156, %c0_157, %c0_158] : memref<9x4x4xf32, #tpu.memory_space<vmem>>, vector<1x4x4xf32>
    %312 = vector.shape_cast %311 : vector<1x4x4xf32> to vector<4x4xf32>
    %cst_159 = arith.constant 0.000000e+00 : f32
    %313 = vector.broadcast %cst_159 : f32 to vector<4x16xf32>
    %314 = vector.extract_strided_slice %294 {offsets = [0, 0], sizes = [4, 496], strides = [1, 1]} : vector<4x512xf32> to vector<4x496xf32>
    %315 = tpu.concatenate %313, %314 in 1 : vector<4x16xf32>, vector<4x496xf32> -> vector<4x512xf32>
    %cst_160 = arith.constant 0.000000e+00 : f32
    %316 = vector.shape_cast %12 : vector<1x512xi1> to vector<1x512xi1>
    %317 = vector.broadcast %316 : vector<1x512xi1> to vector<4x512xi1>
    %318 = vector.broadcast %cst_160 : f32 to vector<4x512xf32>
    %319 = arith.select %317, %315, %318 : vector<4x512xi1>, vector<4x512xf32>
    %cst_161 = arith.constant dense<0.000000e+00> : vector<4x512xf32>
    %320 = tpu.matmul %312, %319, %cst_161 {dimension_numbers = #tpu.dot_dimension_numbers<[1], [0], [0], [1], [0, 0, 1, 1], [], []>} : vector<4x4xf32>, vector<4x512xf32>, vector<4x512xf32> -> vector<4x512xf32>
    %321 = arith.addf %310, %320 : vector<4x512xf32>
    %c2_162 = arith.constant 2 : index
    %c0_163 = arith.constant 0 : index
    %c0_164 = arith.constant 0 : index
    %322 = vector.load %arg7[%c2_162, %c0_163, %c0_164] : memref<9x4x4xf32, #tpu.memory_space<vmem>>, vector<1x4x4xf32>
    %323 = vector.shape_cast %322 : vector<1x4x4xf32> to vector<4x4xf32>
    %cst_165 = arith.constant 0.000000e+00 : f32
    %324 = vector.broadcast %cst_165 : f32 to vector<4x15xf32>
    %325 = vector.extract_strided_slice %294 {offsets = [0, 0], sizes = [4, 497], strides = [1, 1]} : vector<4x512xf32> to vector<4x497xf32>
    %326 = tpu.concatenate %324, %325 in 1 : vector<4x15xf32>, vector<4x497xf32> -> vector<4x512xf32>
    %cst_166 = arith.constant 0.000000e+00 : f32
    %327 = vector.shape_cast %10 : vector<1x512xi1> to vector<1x512xi1>
    %328 = vector.broadcast %327 : vector<1x512xi1> to vector<4x512xi1>
    %329 = vector.broadcast %cst_166 : f32 to vector<4x512xf32>
    %330 = arith.select %328, %326, %329 : vector<4x512xi1>, vector<4x512xf32>
    %cst_167 = arith.constant 0.000000e+00 : f32
    %331 = vector.shape_cast %12 : vector<1x512xi1> to vector<1x512xi1>
    %332 = vector.broadcast %331 : vector<1x512xi1> to vector<4x512xi1>
    %333 = vector.broadcast %cst_167 : f32 to vector<4x512xf32>
    %334 = arith.select %332, %330, %333 : vector<4x512xi1>, vector<4x512xf32>
    %cst_168 = arith.constant dense<0.000000e+00> : vector<4x512xf32>
    %335 = tpu.matmul %323, %334, %cst_168 {dimension_numbers = #tpu.dot_dimension_numbers<[1], [0], [0], [1], [0, 0, 1, 1], [], []>} : vector<4x4xf32>, vector<4x512xf32>, vector<4x512xf32> -> vector<4x512xf32>
    %336 = arith.addf %321, %335 : vector<4x512xf32>
    %c3_169 = arith.constant 3 : index
    %c0_170 = arith.constant 0 : index
    %c0_171 = arith.constant 0 : index
    %337 = vector.load %arg7[%c3_169, %c0_170, %c0_171] : memref<9x4x4xf32, #tpu.memory_space<vmem>>, vector<1x4x4xf32>
    %338 = vector.shape_cast %337 : vector<1x4x4xf32> to vector<4x4xf32>
    %cst_172 = arith.constant 0.000000e+00 : f32
    %339 = vector.broadcast %cst_172 : f32 to vector<4x1xf32>
    %340 = vector.extract_strided_slice %294 {offsets = [0, 0], sizes = [4, 511], strides = [1, 1]} : vector<4x512xf32> to vector<4x511xf32>
    %341 = tpu.concatenate %339, %340 in 1 : vector<4x1xf32>, vector<4x511xf32> -> vector<4x512xf32>
    %cst_173 = arith.constant 0.000000e+00 : f32
    %342 = vector.shape_cast %8 : vector<1x512xi1> to vector<1x512xi1>
    %343 = vector.broadcast %342 : vector<1x512xi1> to vector<4x512xi1>
    %344 = vector.broadcast %cst_173 : f32 to vector<4x512xf32>
    %345 = arith.select %343, %341, %344 : vector<4x512xi1>, vector<4x512xf32>
    %cst_174 = arith.constant dense<0.000000e+00> : vector<4x512xf32>
    %346 = tpu.matmul %338, %345, %cst_174 {dimension_numbers = #tpu.dot_dimension_numbers<[1], [0], [0], [1], [0, 0, 1, 1], [], []>} : vector<4x4xf32>, vector<4x512xf32>, vector<4x512xf32> -> vector<4x512xf32>
    %347 = arith.addf %336, %346 : vector<4x512xf32>
    %c4_175 = arith.constant 4 : index
    %c0_176 = arith.constant 0 : index
    %c0_177 = arith.constant 0 : index
    %348 = vector.load %arg7[%c4_175, %c0_176, %c0_177] : memref<9x4x4xf32, #tpu.memory_space<vmem>>, vector<1x4x4xf32>
    %349 = vector.shape_cast %348 : vector<1x4x4xf32> to vector<4x4xf32>
    %cst_178 = arith.constant dense<0.000000e+00> : vector<4x512xf32>
    %350 = tpu.matmul %349, %294, %cst_178 {dimension_numbers = #tpu.dot_dimension_numbers<[1], [0], [0], [1], [0, 0, 1, 1], [], []>} : vector<4x4xf32>, vector<4x512xf32>, vector<4x512xf32> -> vector<4x512xf32>
    %351 = arith.addf %347, %350 : vector<4x512xf32>
    %c5_179 = arith.constant 5 : index
    %c0_180 = arith.constant 0 : index
    %c0_181 = arith.constant 0 : index
    %352 = vector.load %arg7[%c5_179, %c0_180, %c0_181] : memref<9x4x4xf32, #tpu.memory_space<vmem>>, vector<1x4x4xf32>
    %353 = vector.shape_cast %352 : vector<1x4x4xf32> to vector<4x4xf32>
    %cst_182 = arith.constant 0.000000e+00 : f32
    %354 = vector.broadcast %cst_182 : f32 to vector<4x1xf32>
    %355 = vector.extract_strided_slice %294 {offsets = [0, 1], sizes = [4, 511], strides = [1, 1]} : vector<4x512xf32> to vector<4x511xf32>
    %356 = tpu.concatenate %355, %354 in 1 : vector<4x511xf32>, vector<4x1xf32> -> vector<4x512xf32>
    %cst_183 = arith.constant 0.000000e+00 : f32
    %357 = vector.shape_cast %10 : vector<1x512xi1> to vector<1x512xi1>
    %358 = vector.broadcast %357 : vector<1x512xi1> to vector<4x512xi1>
    %359 = vector.broadcast %cst_183 : f32 to vector<4x512xf32>
    %360 = arith.select %358, %356, %359 : vector<4x512xi1>, vector<4x512xf32>
    %cst_184 = arith.constant dense<0.000000e+00> : vector<4x512xf32>
    %361 = tpu.matmul %353, %360, %cst_184 {dimension_numbers = #tpu.dot_dimension_numbers<[1], [0], [0], [1], [0, 0, 1, 1], [], []>} : vector<4x4xf32>, vector<4x512xf32>, vector<4x512xf32> -> vector<4x512xf32>
    %362 = arith.addf %351, %361 : vector<4x512xf32>
    %c6_185 = arith.constant 6 : index
    %c0_186 = arith.constant 0 : index
    %c0_187 = arith.constant 0 : index
    %363 = vector.load %arg7[%c6_185, %c0_186, %c0_187] : memref<9x4x4xf32, #tpu.memory_space<vmem>>, vector<1x4x4xf32>
    %364 = vector.shape_cast %363 : vector<1x4x4xf32> to vector<4x4xf32>
    %cst_188 = arith.constant 0.000000e+00 : f32
    %365 = vector.broadcast %cst_188 : f32 to vector<4x15xf32>
    %366 = vector.extract_strided_slice %294 {offsets = [0, 15], sizes = [4, 497], strides = [1, 1]} : vector<4x512xf32> to vector<4x497xf32>
    %367 = tpu.concatenate %366, %365 in 1 : vector<4x497xf32>, vector<4x15xf32> -> vector<4x512xf32>
    %cst_189 = arith.constant 0.000000e+00 : f32
    %368 = vector.shape_cast %8 : vector<1x512xi1> to vector<1x512xi1>
    %369 = vector.broadcast %368 : vector<1x512xi1> to vector<4x512xi1>
    %370 = vector.broadcast %cst_189 : f32 to vector<4x512xf32>
    %371 = arith.select %369, %367, %370 : vector<4x512xi1>, vector<4x512xf32>
    %cst_190 = arith.constant 0.000000e+00 : f32
    %372 = vector.shape_cast %14 : vector<1x512xi1> to vector<1x512xi1>
    %373 = vector.broadcast %372 : vector<1x512xi1> to vector<4x512xi1>
    %374 = vector.broadcast %cst_190 : f32 to vector<4x512xf32>
    %375 = arith.select %373, %371, %374 : vector<4x512xi1>, vector<4x512xf32>
    %cst_191 = arith.constant dense<0.000000e+00> : vector<4x512xf32>
    %376 = tpu.matmul %364, %375, %cst_191 {dimension_numbers = #tpu.dot_dimension_numbers<[1], [0], [0], [1], [0, 0, 1, 1], [], []>} : vector<4x4xf32>, vector<4x512xf32>, vector<4x512xf32> -> vector<4x512xf32>
    %377 = arith.addf %362, %376 : vector<4x512xf32>
    %c7_192 = arith.constant 7 : index
    %c0_193 = arith.constant 0 : index
    %c0_194 = arith.constant 0 : index
    %378 = vector.load %arg7[%c7_192, %c0_193, %c0_194] : memref<9x4x4xf32, #tpu.memory_space<vmem>>, vector<1x4x4xf32>
    %379 = vector.shape_cast %378 : vector<1x4x4xf32> to vector<4x4xf32>
    %cst_195 = arith.constant 0.000000e+00 : f32
    %380 = vector.broadcast %cst_195 : f32 to vector<4x16xf32>
    %381 = vector.extract_strided_slice %294 {offsets = [0, 16], sizes = [4, 496], strides = [1, 1]} : vector<4x512xf32> to vector<4x496xf32>
    %382 = tpu.concatenate %381, %380 in 1 : vector<4x496xf32>, vector<4x16xf32> -> vector<4x512xf32>
    %cst_196 = arith.constant 0.000000e+00 : f32
    %383 = vector.shape_cast %14 : vector<1x512xi1> to vector<1x512xi1>
    %384 = vector.broadcast %383 : vector<1x512xi1> to vector<4x512xi1>
    %385 = vector.broadcast %cst_196 : f32 to vector<4x512xf32>
    %386 = arith.select %384, %382, %385 : vector<4x512xi1>, vector<4x512xf32>
    %cst_197 = arith.constant dense<0.000000e+00> : vector<4x512xf32>
    %387 = tpu.matmul %379, %386, %cst_197 {dimension_numbers = #tpu.dot_dimension_numbers<[1], [0], [0], [1], [0, 0, 1, 1], [], []>} : vector<4x4xf32>, vector<4x512xf32>, vector<4x512xf32> -> vector<4x512xf32>
    %388 = arith.addf %377, %387 : vector<4x512xf32>
    %c8_198 = arith.constant 8 : index
    %c0_199 = arith.constant 0 : index
    %c0_200 = arith.constant 0 : index
    %389 = vector.load %arg7[%c8_198, %c0_199, %c0_200] : memref<9x4x4xf32, #tpu.memory_space<vmem>>, vector<1x4x4xf32>
    %390 = vector.shape_cast %389 : vector<1x4x4xf32> to vector<4x4xf32>
    %cst_201 = arith.constant 0.000000e+00 : f32
    %391 = vector.broadcast %cst_201 : f32 to vector<4x17xf32>
    %392 = vector.extract_strided_slice %294 {offsets = [0, 17], sizes = [4, 495], strides = [1, 1]} : vector<4x512xf32> to vector<4x495xf32>
    %393 = tpu.concatenate %392, %391 in 1 : vector<4x495xf32>, vector<4x17xf32> -> vector<4x512xf32>
    %cst_202 = arith.constant 0.000000e+00 : f32
    %394 = vector.shape_cast %10 : vector<1x512xi1> to vector<1x512xi1>
    %395 = vector.broadcast %394 : vector<1x512xi1> to vector<4x512xi1>
    %396 = vector.broadcast %cst_202 : f32 to vector<4x512xf32>
    %397 = arith.select %395, %393, %396 : vector<4x512xi1>, vector<4x512xf32>
    %cst_203 = arith.constant 0.000000e+00 : f32
    %398 = vector.shape_cast %14 : vector<1x512xi1> to vector<1x512xi1>
    %399 = vector.broadcast %398 : vector<1x512xi1> to vector<4x512xi1>
    %400 = vector.broadcast %cst_203 : f32 to vector<4x512xf32>
    %401 = arith.select %399, %397, %400 : vector<4x512xi1>, vector<4x512xf32>
    %cst_204 = arith.constant dense<0.000000e+00> : vector<4x512xf32>
    %402 = tpu.matmul %390, %401, %cst_204 {dimension_numbers = #tpu.dot_dimension_numbers<[1], [0], [0], [1], [0, 0, 1, 1], [], []>} : vector<4x4xf32>, vector<4x512xf32>, vector<4x512xf32> -> vector<4x512xf32>
    %403 = arith.addf %388, %402 : vector<4x512xf32>
    %c0_205 = arith.constant 0 : index
    %c0_206 = arith.constant 0 : index
    %404 = vector.load %arg8[%c0_205, %c0_206] : memref<4x1xf32, #tpu.memory_space<vmem>>, vector<4x1xf32>
    %405 = vector.broadcast %404 : vector<4x1xf32> to vector<4x512xf32>
    %406 = arith.addf %403, %405 : vector<4x512xf32>
    %cst_207 = arith.constant 0.000000e+00 : f32
    %407 = vector.broadcast %cst_207 : f32 to vector<4x512xf32>
    %408 = arith.maximumf %406, %407 : vector<4x512xf32>
    %409 = vector.extract_strided_slice %408 {offsets = [0, 0], sizes = [4, 256], strides = [1, 1]} : vector<4x512xf32> to vector<4x256xf32>
    %c0_208 = arith.constant 0 : index
    %c0_209 = arith.constant 0 : index
    %c0_210 = arith.constant 0 : index
    %410 = vector.load %arg9[%c0_208, %c0_209, %c0_210] : memref<2x4x256xf32, #tpu.memory_space<vmem>>, vector<1x4x256xf32>
    %411 = vector.shape_cast %410 : vector<1x4x256xf32> to vector<4x256xf32>
    %412 = vector.shape_cast %409 : vector<4x256xf32> to vector<1x4x256xf32>
    tpu.vector_store %arg9[%c0_208, %c0_209, %c0_210], %412 {strides = array<i32>} : memref<2x4x256xf32, #tpu.memory_space<vmem>>, vector<1x4x256xf32>,
    %413 = vector.extract_strided_slice %408 {offsets = [0, 256], sizes = [4, 256], strides = [1, 1]} : vector<4x512xf32> to vector<4x256xf32>
    %c1_211 = arith.constant 1 : index
    %c0_212 = arith.constant 0 : index
    %c0_213 = arith.constant 0 : index
    %414 = vector.load %arg9[%c1_211, %c0_212, %c0_213] : memref<2x4x256xf32, #tpu.memory_space<vmem>>, vector<1x4x256xf32>
    %415 = vector.shape_cast %414 : vector<1x4x256xf32> to vector<4x256xf32>
    %416 = vector.shape_cast %413 : vector<4x256xf32> to vector<1x4x256xf32>
    tpu.vector_store %arg9[%c1_211, %c0_212, %c0_213], %416 {strides = array<i32>} : memref<2x4x256xf32, #tpu.memory_space<vmem>>, vector<1x4x256xf32>,
    return
  }
}

</mosaic_0001>

<bundles_post_ra>
// kernel: upconv_forward.1
= control target key start
LH: loop header
LB: loop body
LE: loop exit
PB: predicated region body
PF: predicated region fallthrough
CT: control target
= control target key end

     0   :  { %v32_v0 = vlaneseq  ;;  %v4301_v43 = vmov 1.0   ;;  %s4302_s20 = smov 1   ;;  %s4305_s21 = smov 17   ;;  %s5579_s0 = inlined_call_operand.vmem [shape: f32[2,8,64], index: 0, kind: input, shape index: {}]   ;;  %s5580_s2 = inlined_call_operand.vmem [shape: f32[4,4,8], index: 2, kind: input, shape index: {}]   ;;  %s5581_s3 = inlined_call_operand.vmem [shape: f32[4,1], index: 3, kind: input, shape index: {}]   ;;  %s5582_s1 = inlined_call_operand.vmem [shape: f32[2,4,256], index: 1, kind: input, shape index: {}]   ;;  %s5583_s5 = inlined_call_operand.vmem [shape: f32[9,4,4], index: 5, kind: input, shape index: {}]   ;;  %s5584_s4 = inlined_call_operand.vmem [shape: f32[9,4,4], index: 4, kind: input, shape index: {}]   ;;  %s5585_s6 = inlined_call_operand.vmem [shape: f32[4,1], index: 6, kind: input, shape index: {}]   ;;  %s5586_s8 = inlined_call_operand.vmem [shape: f32[4,1], index: 8, kind: input, shape index: {}]   ;;  %s5587_s7 = inlined_call_operand.vmem [shape: f32[9,4,4], index: 7, kind: input, shape index: {}]   ;;  %s5588_s9 = inlined_call_operand.vmem [shape: f32[2,4,256], index: 9, kind: output, shape index: {}]  }
   0x1   :  { %v154_v60 = vld [vmem:[%s5579_s0] sm:$0xff]  ;;  %v4010_v61 = vld [vmem:[%s5579_s0 + $0x8] sm:$0xff]  ;;  %s4308_s28 = smov 113   ;;  %s4309_s10 = smov 112  }
   0x2   :  { %v4361_v1 = vand.u32 127, %v32_v0  ;;  %v4363_v2 = vshrl.u32 %v32_v0, 7  ;;  %v4029_v62 = vld [vmem:[%s5580_s2 + $0x4] sm:$0xf]  ;;  %s4310_s0 = smov 111  }
   0x4   :  { %v73_v3 = vadd.s32 56, %v4363_v2  ;;  %v4367_v4 = vadd.s32 128, %v4361_v1  ;;  %v72_v5 = vadd.s32 48, %v4363_v2  ;;  %v71_v6 = vadd.s32 40, %v4363_v2 }
   0x5   :  { %v70_v7 = vadd.s32 32, %v4363_v2  ;;  %v69_v8 = vadd.s32 24, %v4363_v2  ;;  %v68_v9 = vadd.s32 16, %v4363_v2  ;;  %v67_v10 = vadd.s32 8, %v4363_v2 }
   0x6   :  { %v81_v11 = vshra.s32 %v73_v3, 3  ;;  %v89_v12 = vand.u32 7, %v73_v3  ;;  %v80_v13 = vshra.s32 %v72_v5, 3  ;;  %v88_v14 = vand.u32 7, %v72_v5  ;;  %v244_v5 = vld [vmem:[%s5580_s2] sm:$0xf] }
   0x7   :  { %v79_v15 = vshra.s32 %v71_v6, 3  ;;  %v87_v16 = vand.u32 7, %v71_v6  ;;  %v78_v17 = vshra.s32 %v70_v7, 3  ;;  %v86_v18 = vand.u32 7, %v70_v7  ;;  %v4038_v6 = vld [vmem:[%s5580_s2 + $0x8] sm:$0xf] }
   0x8   :  { %v97_v19 = vmul.u32 2, %v81_v11  ;;  %v113_v20 = vmul.u32 2, %v89_v12  ;;  %v96_v21 = vmul.u32 2, %v80_v13  ;;  %v112_v22 = vmul.u32 2, %v88_v14  ;;  %v4043_v7 = vld [vmem:[%s5580_s2 + $0xc] sm:$0xf] }
   0x9   :  { %v95_v23 = vmul.u32 2, %v79_v15  ;;  %v111_v24 = vmul.u32 2, %v87_v16  ;;  %v94_v25 = vmul.u32 2, %v78_v17  ;;  %v110_v26 = vmul.u32 2, %v86_v18  ;;  %s4304_s2 = smov 16  }
   0xa   :  { %v105_v27 = vmul.u32 16, %v97_v19  ;;  %v104_v28 = vmul.u32 16, %v96_v21  ;;  %v77_v29 = vshra.s32 %v69_v8, 3  ;;  %v85_v30 = vand.u32 7, %v69_v8 }
   0xb   :  { %v103_v31 = vmul.u32 16, %v95_v23  ;;  %v102_v32 = vmul.u32 16, %v94_v25  ;;  %v76_v33 = vshra.s32 %v68_v9, 3  ;;  %v84_v34 = vand.u32 7, %v68_v9 }
   0xc   :  { %v121_v35 = vadd.s32 %v113_v20, %v105_v27  ;;  %v120_v36 = vadd.s32 %v112_v22, %v104_v28  ;;  %v93_v37 = vmul.u32 2, %v77_v29  ;;  %v109_v38 = vmul.u32 2, %v85_v30  ;;  %v4048_v27 = vld [vmem:[%s5582_s1 + $0x8] sm:$0xff] }
   0xd   :  { %v119_v39 = vadd.s32 %v111_v24, %v103_v31  ;;  %v118_v40 = vadd.s32 %v110_v26, %v102_v32  ;;  %v92_v41 = vmul.u32 2, %v76_v33  ;;  %v108_v42 = vmul.u32 2, %v84_v34  ;;  %v655_v24 = vld [vmem:[%s5581_s3] sm:$0xf]  ;;  %s4307_s3 = smov 127  }
   0xe   :  { %vm136_vm0 = vcmp.eq.s32.totalorder %v4361_v1, %v121_v35  ;;  %vm137_vm1 = vcmp.eq.s32.totalorder %v4367_v4, %v121_v35  ;;  %vm134_vm2 = vcmp.eq.s32.totalorder %v4361_v1, %v120_v36  ;;  %vm135_vm3 = vcmp.eq.s32.totalorder %v4367_v4, %v120_v36  ;;  %v665_v26 = vld [vmem:[%s5582_s1] sm:$0xff]  ;;  %s4306_s1 = smov 15  }
   0xf   :  { %3992 = vmatpush.msk.msra.mxu0 %vm136_vm0, %v4301_v43  ;;  %4001 = vmatpush.msk.msra.mxu1 %vm137_vm1, %v4301_v43  ;;  %vm132_vm4 = vcmp.eq.s32.totalorder %v4361_v1, %v119_v39  ;;  %v101_v44 = vmul.u32 16, %v93_v37  ;;  %vm133_vm5 = vcmp.eq.s32.totalorder %v4367_v4, %v119_v39  ;;  %v100_v45 = vmul.u32 16, %v92_v41  ;;  %669 = vst [vmem:[#allocation1] ss:$2 sm:$0xff] %v665_v26 }
  0x10   :  { %4011 = vmatpush.msk.msra.mxu2 %vm136_vm0, %v4301_v43  ;;  %4020 = vmatpush.msk.msra.mxu3 %vm137_vm1, %v4301_v43  ;;  %v75_v46 = vshra.s32 %v67_v10, 3  ;;  %v83_v47 = vand.u32 7, %v67_v10  ;;  %vm130_vm6 = vcmp.eq.s32.totalorder %v4361_v1, %v118_v40  ;;  %v74_v49 = vshra.s32 %v4363_v2, 3 }
  0x11   :  { %3993 = vmatpush.msk.msra.mxu0 %vm134_vm2, %v4301_v43  ;;  %4002 = vmatpush.msk.msra.mxu1 %vm135_vm3, %v4301_v43  ;;  %v117_v48 = vadd.s32 %v109_v38, %v101_v44  ;;  %v82_v50 = vand.u32 7, %v4363_v2  ;;  %vm131_vm7 = vcmp.eq.s32.totalorder %v4367_v4, %v118_v40  ;;  %v116_v51 = vadd.s32 %v108_v42, %v100_v45 }
  0x12   :  { %4012 = vmatpush.msk.msra.mxu2 %vm134_vm2, %v4301_v43  ;;  %4021 = vmatpush.msk.msra.mxu3 %vm135_vm3, %v4301_v43  ;;  %v91_v52 = vmul.u32 2, %v75_v46  ;;  %v107_v53 = vmul.u32 2, %v83_v47  ;;  %v90_v54 = vmul.u32 2, %v74_v49  ;;  %vm155_vm0 = vcmask 523264  }
  0x13   :  { %3994 = vmatpush.msk.msra.mxu0 %vm132_vm4, %v4301_v43  ;;  %4003 = vmatpush.msk.msra.mxu1 %vm133_vm5, %v4301_v43  ;;  %v106_v55 = vmul.u32 2, %v82_v50  ;;  %vm128_vm8 = vcmp.eq.s32.totalorder %v4361_v1, %v117_v48  ;;  %vm129_vm9 = vcmp.eq.s32.totalorder %v4367_v4, %v117_v48  ;;  %vm126_vm10 = vcmp.eq.s32.totalorder %v4361_v1, %v116_v51 }
  0x14   :  { %4013 = vmatpush.msk.msra.mxu2 %vm132_vm4, %v4301_v43  ;;  %4022 = vmatpush.msk.msra.mxu3 %vm133_vm5, %v4301_v43  ;;  %v99_v56 = vmul.u32 16, %v91_v52  ;;  %v98_v57 = vmul.u32 16, %v90_v54  ;;  %vm127_vm11 = vcmp.eq.s32.totalorder %v4367_v4, %v116_v51  ;;  %vm247_vm1 = vcmask 64512  }
  0x15   :  { %3995 = vmatpush.msk.msra.mxu0 %vm130_vm6, %v4301_v43  ;;  %4004 = vmatpush.msk.msra.mxu1 %vm131_vm7, %v4301_v43  ;;  %v4303_v10 = vmov 0   ;;  %vm5591_vm2 = vcmask 7168   ;;  %vm5589_vm3 = vcmask 130048   ;;  %vm5590_vm4 = vcmask 138240  }
  0x16   :  { %4014 = vmatpush.msk.msra.mxu2 %vm130_vm6, %v4301_v43  ;;  %4023 = vmatpush.msk.msra.mxu3 %vm131_vm7, %v4301_v43  ;;  %v115_v58 = vadd.s32 %v107_v53, %v99_v56  ;;  %v114_v59 = vadd.s32 %v106_v55, %v98_v57  ;;  %v4508_v28 = vld.sshfl [vmem:[#allocation1] sm:$0xff pattern:$0x75316420]  ;;  %v4510_v29 = vld.sshfl [vmem:[#allocation1 + $0x8] sm:$0xff pattern:$0x75316420] }
  0x17   :  { %3996 = vmatpush.msk.msra.mxu0 %vm128_vm8, %v4301_v43  ;;  %4005 = vmatpush.msk.msra.mxu1 %vm129_vm9, %v4301_v43  ;;  %673 = vst [vmem:[#allocation1] ss:$2 sm:$0xff] %v4048_v27 }
  0x18   :  { %4015 = vmatpush.msk.msra.mxu2 %vm128_vm8, %v4301_v43  ;;  %4024 = vmatpush.msk.msra.mxu3 %vm129_vm9, %v4301_v43  ;;  %vm124_vm12 = vcmp.eq.s32.totalorder %v4361_v1, %v115_v58  ;;  %vm125_vm13 = vcmp.eq.s32.totalorder %v4367_v4, %v115_v58  ;;  %vm122_vm14 = vcmp.eq.s32.totalorder %v4361_v1, %v114_v59 }
  0x19   :  { %3997 = vmatpush.msk.msra.mxu0 %vm126_vm10, %v4301_v43  ;;  %4006 = vmatpush.msk.msra.mxu1 %vm127_vm11, %v4301_v43  ;;  %vm123_vm15 = vcmp.eq.s32.totalorder %v4367_v4, %v114_v59 }
  0x1a   :  { %4016 = vmatpush.msk.msra.mxu2 %vm126_vm10, %v4301_v43  ;;  %4025 = vmatpush.msk.msra.mxu3 %vm127_vm11, %v4301_v43  ;;  %vm750_vm11 = vcmask 1043456  }
  0x1b   :  { %3998 = vmatpush.msk.msra.mxu0 %vm124_vm12, %v4301_v43  ;;  %4007 = vmatpush.msk.msra.mxu1 %vm125_vm13, %v4301_v43 }
  0x1c   :  { %4017 = vmatpush.msk.msra.mxu2 %vm124_vm12, %v4301_v43  ;;  %4026 = vmatpush.msk.msra.mxu3 %vm125_vm13, %v4301_v43 }
  0x1d   :  { %3999 = vmatpush.msk.msra.mxu0 %vm122_vm14, %v4301_v43  ;;  %4008 = vmatpush.msk.msra.mxu1 %vm123_vm15, %v4301_v43 }
  0x1e   :  { %4018 = vmatpush.msk.msra.mxu2 %vm122_vm14, %v4301_v43  ;;  %4027 = vmatpush.msk.msra.mxu3 %vm123_vm15, %v4301_v43  ;;  %v4514_v30 = vld.sshfl [vmem:[#allocation1] sm:$0xff pattern:$0x75316420]  ;;  %v4520_v31 = vld.sshfl [vmem:[#allocation1 + $0x8] sm:$0xff pattern:$0x75316420] }
  0x1f   :  { %4000 = vmatmul.msk.f32.vlgmr.msra.gmra.mxu0 %vm155_vm0, %v154_v60  ;;  %4009 = vmatmul.msk.f32.vlgmr.msra.gmra.mxu1 %vm155_vm0, %v154_v60  ;;  %vm746_vm14 = vcmask 31744   ;;  %vm5592_vm15 = vcmask 121856  }
  0x20   :  { %4019 = vmatmul.msk.f32.vlgmr.msra.gmra.mxu2 %vm155_vm0, %v4010_v61  ;;  %4028 = vmatmul.msk.f32.vlgmr.msra.gmra.mxu3 %vm155_vm0, %v4010_v61 }
  0x21   :  { %4300 = vset.pattern.permute.xlu0 %v4303_v10 }
  0x9c   :  { %v176_v63 = vpop.f32.mrf.mxu0  ;;  %v196_v0 = vpop.f32.mrf.mxu1 }
  0x9d   :  { %266 = vmatpush.msrb.mxu0 %v176_v63  ;;  %286 = vmatpush.msrb.mxu1 %v196_v0 }
  0x9e   :  { %4030 = vmatmul.msk.f32.vlgmr.msrb.gmra.mxu0 %vm247_vm1, %v4029_v62  ;;  %4031 = vmatmul.msk.f32.vlgmr.msrb.gmra.mxu1 %vm247_vm1, %v4029_v62 }
  0x9f   :  { %390 = vmatpush.msra.mxu1 %v196_v0  ;;  %370 = vmatpush.msra.mxu0 %v176_v63 }
  0xa1   :  { %475 = vmatpush.msrb.mxu1 %v196_v0  ;;  %455 = vmatpush.msrb.mxu0 %v176_v63 }
  0xa3   :  { %v221_v2 = vpop.f32.mrf.mxu2  ;;  %v241_v3 = vpop.f32.mrf.mxu3 }
  0xa4   :  { %306 = vmatpush.msrb.mxu2 %v221_v2  ;;  %326 = vmatpush.msrb.mxu3 %v241_v3 }
  0xa5   :  { %4032 = vmatmul.msk.f32.vlgmr.msrb.gmra.mxu2 %vm247_vm1, %v4029_v62  ;;  %4033 = vmatmul.msk.f32.vlgmr.msrb.gmra.mxu3 %vm247_vm1, %v4029_v62 }
  0xa6   :  { %4034 = vmatmul.msk.f32.vlgmr.msra.gmra.mxu0 %vm247_vm1, %v244_v5  ;;  %4035 = vmatmul.msk.f32.vlgmr.msra.gmra.mxu1 %vm247_vm1, %v244_v5 }
  0xa7   :  { %410 = vmatpush.msra.mxu2 %v221_v2  ;;  %565 = vmatpush.msra.mxu0 %v176_v63 }
  0xa8   :  { %585 = vmatpush.msra.mxu1 %v196_v0  ;;  %430 = vmatpush.msra.mxu3 %v241_v3 }
  0xa9   :  { %495 = vmatpush.msrb.mxu2 %v221_v2 }
  0xaa   :  { %515 = vmatpush.msrb.mxu3 %v241_v3 }
  0xad   :  { %4036 = vmatmul.msk.f32.vlgmr.msra.gmra.mxu2 %vm247_vm1, %v244_v5  ;;  %4037 = vmatmul.msk.f32.vlgmr.msra.gmra.mxu3 %vm247_vm1, %v244_v5 }
  0xae   :  { %605 = vmatpush.msra.mxu2 %v221_v2  ;;  %625 = vmatpush.msra.mxu3 %v241_v3 }
  0xaf   :  { %4039 = vmatmul.msk.f32.vlgmr.msrb.gmra.mxu0 %vm247_vm1, %v4038_v6  ;;  %4040 = vmatmul.msk.f32.vlgmr.msrb.gmra.mxu1 %vm247_vm1, %v4038_v6 }
  0xb5   :  { %4041 = vmatmul.msk.f32.vlgmr.msrb.gmra.mxu2 %vm247_vm1, %v4038_v6  ;;  %4042 = vmatmul.msk.f32.vlgmr.msrb.gmra.mxu3 %vm247_vm1, %v4038_v6 }
  0xb7   :  { %4045 = vmatmul.msk.f32.vlgmr.msra.gmra.mxu1 %vm247_vm1, %v4043_v7  ;;  %4044 = vmatmul.msk.f32.vlgmr.msra.gmra.mxu0 %vm247_vm1, %v4043_v7 }
  0xbd   :  { %4046 = vmatmul.msk.f32.vlgmr.msra.gmra.mxu2 %vm247_vm1, %v4043_v7  ;;  %4047 = vmatmul.msk.f32.vlgmr.msra.gmra.mxu3 %vm247_vm1, %v4043_v7 }
 0x11b   :  { %v268_v8 = vpop.f32.mrf.mxu0  ;;  %v288_v9 = vpop.f32.mrf.mxu1 }
 0x11c   :  { %335 = vrot.lane.b32.xlu0 %v268_v8, %s4302_s20 }
 0x123   :  { %v372_v11 = vpop.f32.mrf.mxu0  ;;  %v392_v12 = vpop.f32.mrf.mxu1 }
 0x124   :  { %337 = vrot.lane.b32.xlu0 %v288_v9, %s4302_s20 }
 0x128   :  { %v308_v13 = vpop.f32.mrf.mxu2  ;;  %v328_v14 = vpop.f32.mrf.mxu3 }
 0x129   :  { %339 = vrot.lane.b32.xlu1 %v308_v13, %s4302_s20  ;;  %v37_v13 = vand.u32 15, %v4361_v1 }
 0x12b   :  { %vm4609_vm5 = vcmp.ge.s32.totalorder %v37_v13, 1  ;;  %vm4830_vm1 = vcmp.le.s32.totalorder %v37_v13, 14 }
 0x12c   :  { %v457_v15 = vpop.f32.mrf.mxu0  ;;  %v477_v16 = vpop.f32.mrf.mxu1 }
 0x12d   :  { %524 = vrot.lane.b32.xlu2 %v457_v15, %s4304_s2 }
 0x130   :  { %v4487_v17 = vpop.f32.mrf.mxu2  ;;  %v4489_v18 = vpop.f32.mrf.mxu3 }
 0x131   :  { %341 = vrot.lane.b32.xlu1 %v328_v14, %s4302_s20 }
 0x134   :  { %v587_v19 = vpop.f32.mrf.mxu1  ;;  %v567_v22 = vpop.f32.mrf.mxu0 }
 0x135   :  { %636 = vrot.lane.b32.xlu0 %v587_v19, %s4305_s21  ;;  %526 = vrot.lane.b32.xlu2 %v477_v16, %s4304_s2  ;;  %v4603_v16 = vadd.s32 256, %v4361_v1 }
 0x138   :  { %v497_v20 = vpop.f32.mrf.mxu2  ;;  %v517_v21 = vpop.f32.mrf.mxu3 }
 0x139   :  { %530 = vrot.lane.b32.xlu1 %v517_v21, %s4304_s2 }
 0x13d   :  { %528 = vrot.lane.b32.xlu0 %v497_v20, %s4304_s2  ;;  %634 = vrot.lane.b32.xlu2 %v567_v22, %s4305_s21 }
 0x140   :  { %v607_v23 = vpop.f32.mrf.mxu2  ;;  %v627_v25 = vpop.f32.mrf.mxu3 }
 0x141   :  { %638 = vrot.lane.b32.xlu1 %v607_v23, %s4305_s21 }
 0x145   :  { %658 = vperm.xlu0 %4300, %v655_v24   ;;  %640 = vrot.lane.b32.xlu2 %v627_v25, %s4305_s21  ;;  %v39_v24 = vand.u32 15, %v4603_v16  ;;  %v43_v25 = vshra.s32 %v4603_v16, 4 }
 0x147   :  { %vm4630_vm7 = vcmp.ge.s32.totalorder %v39_v24, 1 }
 0x149   :  { %724 = vrot.lane.b32.xlu1 %v4510_v29, %s4305_s21 }
 0x14d   :  { %726 = vrot.lane.b32.xlu2 %v4514_v30, %s4305_s21  ;;  %1065 = vrot.lane.b32.xlu0 %v4514_v30, %s4304_s2 }
 0x151   :  { %728 = vrot.lane.b32.xlu1 %v4520_v31, %s4305_s21 }
 0x155   :  { %722 = vrot.lane.b32.xlu2 %v4508_v28, %s4305_s21 }
 0x15d   :  { %1063 = vrot.lane.b32.xlu2 %v4510_v29, %s4304_s2 }
 0x187   :  { %v525_v34 = vpop.permute.xlu2 %524 }
 0x188   :  { %v540_v46 = vsel %vm5589_vm3, 0.0, %v525_v34 }
 0x18e   :  { %v336_v32 = vpop.permute.xlu0 %335 }
 0x18f   :  { %v527_v37 = vpop.permute.xlu2 %526  ;;  %v351_v39 = vsel %vm5591_vm2, 0.0, %v336_v32 }
 0x190   :  { %v373_v43 = vadd.f32 %v372_v11, %v351_v39  ;;  %v533_v47 = vsel %vm5589_vm3, %v525_v34, %v527_v37 }
 0x192   :  { %v541_v50 = vadd.f32 %v540_v46, %v373_v43 }
 0x196   :  { %v338_v35 = vpop.permute.xlu0 %337 }
 0x197   :  { %v344_v40 = vsel %vm5591_vm2, %v336_v32, %v338_v35  ;;  %v635_v45 = vpop.permute.xlu2 %634  ;;  %v4626_v32 = vand.u32 15, %v43_v25 }
 0x198   :  { %v393_v44 = vadd.f32 %v392_v12, %v344_v40  ;;  %v650_v48 = vsel %vm5590_vm4, 0.0, %v635_v45  ;;  %v41_v12 = vshra.s32 %v4361_v1, 4 }
 0x199   :  { %v651_v52 = vadd.f32 %v650_v48, %v541_v50  ;;  %vm5593_vm10 = vcmp.ge.s32.totalorder %v4626_v32, 1 }
 0x19a   :  { %v542_v51 = vadd.f32 %v533_v47, %v393_v44  ;;  %v4600_v14 = vand.u32 15, %v41_v12 }
 0x19b   :  { %v340_v33 = vpop.permute.xlu1 %339 }
 0x19c   :  { %v345_v53 = vsel %vm5591_vm2, %v338_v35, %v340_v33  ;;  %vm5597_vm9 = vcmp.ge.s32.totalorder %v4600_v14, 1 }
 0x19d   :  { %v413_v60 = vadd.f32 %v4487_v17, %v345_v53  ;;  %v38_v17 = vand.u32 15, %v4367_v4 }
 0x19f   :  { %v641_v2 = vpop.permute.xlu2 %640  ;;  %vm4622_vm6 = vcmp.ge.s32.totalorder %v38_v17, 1  ;;  %vm4821_vm0 = vcmp.le.s32.totalorder %v38_v17, 14 }
 0x1a3   :  { %v342_v36 = vpop.permute.xlu1 %341 }
 0x1a4   :  { %v346_v63 = vsel %vm5591_vm2, %v340_v33, %v342_v36  ;;  %v5617_v33 = vmov 0 }
 0x1a5   :  { %v433_v5 = vadd.f32 %v4489_v18, %v346_v63  ;;  %v42_v18 = vshra.s32 %v4367_v4, 4  ;;  %v5618_v33 = vsel %vm4630_vm7, 4294967295, %v5617_v33 }
 0x1a6   :  { %5619 = vst [vmem:[#allocation2_spill] sm:$0xff] %v5618_v33 }
 0x1a7   :  { %v637_v38 = vpop.permute.xlu0 %636  ;;  %v727_v11 = vpop.permute.xlu2 %726  ;;  %v4618_v26 = vand.u32 15, %v42_v18 }
 0x1a8   :  { %v643_v49 = vsel %vm5590_vm4, %v635_v45, %v637_v38 }
 0x1a9   :  { %v652_v54 = vadd.f32 %v643_v49, %v542_v51  ;;  %vm5596_vm8 = vcmp.ge.s32.totalorder %v4618_v26, 1  ;;  %v721_v49 = vld [vmem:[%s5583_s5] sm:$0xf] }
 0x1ab   :  { %v531_v41 = vpop.permute.xlu1 %530 }
 0x1af   :  { %v529_v42 = vpop.permute.xlu0 %528  ;;  %v723_v15 = vpop.permute.xlu2 %722 }
 0x1b0   :  { %v534_v57 = vsel %vm5589_vm3, %v527_v37, %v529_v42  ;;  %v535_v3 = vsel %vm5589_vm3, %v529_v42, %v531_v41  ;;  %v737_v21 = vsel %vm5590_vm4, 0.0, %v723_v15  ;;  %v4644_v37 = vadd.s32 384, %v4361_v1 }
 0x1b1   :  { %v543_v62 = vadd.f32 %v534_v57, %v413_v60  ;;  %v544_v8 = vadd.f32 %v535_v3, %v433_v5  ;;  %v738_v35 = vsel %vm4609_vm5, %v737_v21, 0.0 }
 0x1b2   :  { %v742_v40 = vsel %vm5597_vm9, %v738_v35, 0.0  ;;  %v40_v41 = vand.u32 15, %v4644_v37  ;;  %v44_v42 = vshra.s32 %v4644_v37, 4 }
 0x1b3   :  { %v639_v55 = vpop.permute.xlu1 %638  ;;  %4049 = vmatpush.msk.msrb.mxu0 %vm750_vm11, %v742_v40 }
 0x1b4   :  { %v644_v61 = vsel %vm5590_vm4, %v637_v38, %v639_v55  ;;  %v645_v6 = vsel %vm5590_vm4, %v639_v55, %v641_v2  ;;  %v4660_v44 = vand.u32 15, %v44_v42  ;;  %vm4664_vm12 = vcmp.ge.s32.totalorder %v40_v41, 1  ;;  %4050 = vmatmul.msk.f32.vlgmr.msrb.gmra.mxu0 %vm746_vm14, %v721_v49  ;;  %v676_v2 = vld [vmem:[%s5584_s4] sm:$0xf] }
 0x1b5   :  { %v653_v0 = vadd.f32 %v644_v61, %v543_v62  ;;  %v654_v9 = vadd.f32 %v645_v6, %v544_v8 }
 0x1b6   :  { %vm5595_vm13 = vcmp.ge.s32.totalorder %v4660_v44, 1 }
 0x1b7   :  { %v659_v56 = vpop.permute.xlu0 %658  ;;  %v1064_v50 = vpop.permute.xlu2 %1063 }
 0x1b8   :  { %v4536_v58 = vadd.f32 %v659_v56, %v651_v52  ;;  %v4538_v59 = vadd.f32 %v659_v56, %v652_v54  ;;  %v4552_v7 = vadd.f32 %v659_v56, %v653_v0  ;;  %v4560_v10 = vadd.f32 %v659_v56, %v654_v9 }
 0x1ba   :  { %942 = vrot.lane.b32.xlu1 %v4538_v59, %s4304_s2  ;;  %683 = vrot.lane.b32.xlu2 %v4538_v59, %s4305_s21 }
 0x1bb   :  { %681 = vrot.lane.b32.xlu0 %v4536_v58, %s4305_s21  ;;  %v725_v19 = vpop.permute.xlu1 %724 }
 0x1bc   :  { %v730_v22 = vsel %vm5590_vm4, %v723_v15, %v725_v19  ;;  %v731_v23 = vsel %vm5590_vm4, %v725_v19, %v727_v11 }
 0x1bd   :  { %v739_v34 = vsel %vm4622_vm6, %v730_v22, 0.0  ;;  %v740_v36 = vsel %vm4630_vm7, %v731_v23, 0.0 }
 0x1be   :  { %v743_v38 = vsel %vm5596_vm8, %v739_v34, 0.0  ;;  %v744_v39 = vsel %vm5593_vm10, %v740_v36, 0.0  ;;  %v4065_v36 = vld [vmem:[%s5584_s4 + $0x4] sm:$0xf] }
 0x1bf   :  { %4051 = vmatpush.msk.msrb.mxu1 %vm750_vm11, %v743_v38  ;;  %4053 = vmatpush.msk.msrb.mxu2 %vm750_vm11, %v744_v39  ;;  %v4717_v53 = vpop.permute.xlu0 %1065 }
 0x1c0   :  { %4052 = vmatmul.msk.f32.vlgmr.msrb.gmra.mxu1 %vm746_vm14, %v721_v49  ;;  %4054 = vmatmul.msk.f32.vlgmr.msrb.gmra.mxu2 %vm746_vm14, %v721_v49  ;;  %v1070_v38 = vsel %vm5589_vm3, %v1064_v50, %v4717_v53 }
 0x1c1   :  { %v1079_v40 = vsel %vm5593_vm10, %v1070_v38, 0.0 }
 0x1c2   :  { %1184 = vrot.lane.b32.xlu2 %v4538_v59, %s4306_s1  ;;  %940 = vrot.lane.b32.xlu1 %v4536_v58, %s4304_s2 }
 0x1c3   :  { %685 = vrot.lane.b32.xlu0 %v4552_v7, %s4305_s21  ;;  %v729_v43 = vpop.permute.xlu1 %728 }
 0x1c4   :  { %v732_v46 = vsel %vm5590_vm4, %v727_v11, %v729_v43 }
 0x1c5   :  { %v741_v47 = vsel %vm4664_vm12, %v732_v46, 0.0 }
 0x1c6   :  { %v745_v48 = vsel %vm5595_vm13, %v741_v47, 0.0 }
 0x1c7   :  { %4055 = vmatpush.msk.msrb.mxu3 %vm750_vm11, %v745_v48 }
 0x1c8   :  { %4056 = vmatmul.msk.f32.vlgmr.msrb.gmra.mxu3 %vm746_vm14, %v721_v49 }
 0x1ca   :  { %944 = vrot.lane.b32.xlu2 %v4552_v7, %s4304_s2  ;;  %687 = vrot.lane.b32.xlu1 %v4560_v10, %s4305_s21 }
 0x1cb   :  { %946 = vrot.lane.b32.xlu0 %v4560_v10, %s4304_s2 }
 0x1d2   :  { %1061 = vrot.lane.b32.xlu2 %v4508_v28, %s4304_s2  ;;  %1067 = vrot.lane.b32.xlu1 %v4520_v31, %s4304_s2 }
 0x1d3   :  { %1182 = vrot.lane.b32.xlu0 %v4536_v58, %s4306_s1 }
 0x1da   :  { %1320 = vrot.lane.b32.xlu2 %v4514_v30, %s4306_s1  ;;  %1318 = vrot.lane.b32.xlu1 %v4510_v29, %s4306_s1 }
 0x1db   :  { %1186 = vrot.lane.b32.xlu0 %v4552_v7, %s4306_s1 }
 0x1e2   :  { %1443 = vrot.lane.b32.xlu2 %v4538_v59, %s4302_s20  ;;  %1188 = vrot.lane.b32.xlu1 %v4560_v10, %s4306_s1 }
 0x1e3   :  { %1322 = vrot.lane.b32.xlu0 %v4520_v31, %s4306_s1 }
 0x1ea   :  { %1441 = vrot.lane.b32.xlu2 %v4536_v58, %s4302_s20  ;;  %1316 = vrot.lane.b32.xlu1 %v4508_v28, %s4306_s1 }
 0x1eb   :  { %1445 = vrot.lane.b32.xlu0 %v4552_v7, %s4302_s20 }
 0x1f2   :  { %1568 = vrot.lane.b32.xlu2 %v4520_v31, %s4302_s20  ;;  %1447 = vrot.lane.b32.xlu1 %v4560_v10, %s4302_s20 }
 0x1f3   :  { %1564 = vrot.lane.b32.xlu0 %v4510_v29, %s4302_s20 }
 0x1fa   :  { %2005 = vrot.lane.b32.xlu2 %v4520_v31, %s4307_s3  ;;  %1566 = vrot.lane.b32.xlu1 %v4514_v30, %s4302_s20 }
 0x1fb   :  { %1562 = vrot.lane.b32.xlu0 %v4508_v28, %s4302_s20 }
 0x202   :  { %2122 = vrot.lane.b32.xlu2 %v4538_v59, %s4308_s28  ;;  %2003 = vrot.lane.b32.xlu1 %v4514_v30, %s4307_s3 }
 0x203   :  { %1879 = vrot.lane.b32.xlu0 %v4538_v59, %s4307_s3 }
 0x20a   :  { %1883 = vrot.lane.b32.xlu2 %v4560_v10, %s4307_s3  ;;  %1999 = vrot.lane.b32.xlu1 %v4508_v28, %s4307_s3 }
 0x20b   :  { %1877 = vrot.lane.b32.xlu0 %v4536_v58, %s4307_s3 }
 0x212   :  { %2120 = vrot.lane.b32.xlu2 %v4536_v58, %s4308_s28  ;;  %1881 = vrot.lane.b32.xlu1 %v4552_v7, %s4307_s3 }
 0x213   :  { %2001 = vrot.lane.b32.xlu0 %v4510_v29, %s4307_s3 }
 0x214   :  { %v684_v51 = vpop.permute.xlu2 %683 }
 0x21a   :  { %2126 = vrot.lane.b32.xlu2 %v4560_v10, %s4308_s28  ;;  %2260 = vrot.lane.b32.xlu1 %v4520_v31, %s4308_s28 }
 0x21b   :  { %2258 = vrot.lane.b32.xlu0 %v4514_v30, %s4308_s28 }
 0x21c   :  { %v4709_v52 = vpop.permute.xlu2 %1184 }
 0x222   :  { %2505 = vrot.lane.b32.xlu2 %v4514_v30, %s4309_s10  ;;  %2124 = vrot.lane.b32.xlu1 %v4552_v7, %s4308_s28 }
 0x223   :  { %2256 = vrot.lane.b32.xlu0 %v4510_v29, %s4308_s28 }
 0x224   :  { %v945_v54 = vpop.permute.xlu2 %944 }
 0x22a   :  { %2385 = vrot.lane.b32.xlu2 %v4560_v10, %s4309_s10  ;;  %2381 = vrot.lane.b32.xlu1 %v4538_v59, %s4309_s10 }
 0x22b   :  { %2254 = vrot.lane.b32.xlu0 %v4508_v28, %s4308_s28 }
 0x22c   :  { %v943_v55 = vpop.permute.xlu1 %942  ;;  %v1062_v56 = vpop.permute.xlu2 %1061 }
 0x22d   :  { %v682_v57 = vpop.permute.xlu0 %681  ;;  %v1076_v5 = vsel %vm5589_vm3, 0.0, %v1062_v56  ;;  %v1069_v6 = vsel %vm5589_vm3, %v1062_v56, %v1064_v50  ;;  %v949_v23 = vsel %vm5589_vm3, %v943_v55, %v945_v54 }
 0x22e   :  { %v689_v60 = vsel %vm5590_vm4, %v682_v57, %v684_v51  ;;  %v696_v61 = vsel %vm5590_vm4, 0.0, %v682_v57  ;;  %v1077_v11 = vsel %vm5597_vm9, %v1076_v5, 0.0  ;;  %v1078_v25 = vsel %vm5596_vm8, %v1069_v6, 0.0 }
 0x22f   :  { %v706_v62 = vsel %vm4622_vm6, %v689_v60, 0.0  ;;  %v705_v63 = vsel %vm4609_vm5, %v696_v61, 0.0  ;;  %v958_v39 = vsel %vm5593_vm10, %v949_v23, 0.0  ;;  %v5622_v57 = vmov 0 }
 0x230   :  { %v718_v0 = vsel %vm5596_vm8, %v706_v62, 0.0  ;;  %v717_v3 = vsel %vm5597_vm9, %v705_v63, 0.0  ;;  %v5623_v57 = vsel %vm4821_vm0, 4294967295, %v5622_v57  ;;  %v5625_v61 = vmov 0 }
 0x231   :  { %4059 = vmatpush.msk.msra.mxu1 %vm750_vm11, %v718_v0  ;;  %4057 = vmatpush.msk.msra.mxu0 %vm750_vm11, %v717_v3  ;;  %5624 = vst [vmem:[#allocation3_spill] sm:$0xff] %v5623_v57  ;;  %v5626_v61 = vsel %vm4830_vm1, 4294967295, %v5625_v61 }
 0x232   :  { %2501 = vrot.lane.b32.xlu2 %v4508_v28, %s4309_s10  ;;  %4058 = vmatmul.msk.f32.vlgmr.msra.gmra.mxu0 %vm746_vm14, %v676_v2  ;;  %5627 = vst [vmem:[#allocation4_spill] sm:$0xff] %v5626_v61 }
 0x233   :  { %2383 = vrot.lane.b32.xlu1 %v4552_v7, %s4309_s10  ;;  %2507 = vrot.lane.b32.xlu0 %v4520_v31, %s4309_s10 }
 0x234   :  { %4060 = vmatmul.msk.f32.vlgmr.msra.gmra.mxu1 %vm746_vm14, %v676_v2  ;;  %v4750_v8 = vpop.permute.xlu2 %1320  ;;  %v941_v9 = vpop.permute.xlu1 %940 }
 0x235   :  { %v948_v12 = vsel %vm5589_vm3, %v941_v9, %v943_v55  ;;  %v955_v15 = vsel %vm5589_vm3, 0.0, %v941_v9  ;;  %v686_v18 = vpop.permute.xlu0 %685 }
 0x236   :  { %v956_v19 = vsel %vm5597_vm9, %v955_v15, 0.0  ;;  %v957_v21 = vsel %vm5596_vm8, %v948_v12, 0.0  ;;  %v690_v22 = vsel %vm5590_vm4, %v684_v51, %v686_v18  ;;  %v4074_v51 = vld [vmem:[%s5583_s5 + $0x4] sm:$0xf] }
 0x237   :  { %v707_v34 = vsel %vm4630_vm7, %v690_v22, 0.0  ;;  %4066 = vmatpush.msk.msrb.mxu0 %vm750_vm11, %v956_v19  ;;  %4068 = vmatpush.msk.msrb.mxu1 %vm750_vm11, %v957_v21  ;;  %v2871_v19 = vld [vmem:[%s5585_s6] sm:$0xf] }
 0x238   :  { %v719_v35 = vsel %vm5593_vm10, %v707_v34, 0.0 }
 0x239   :  { %4077 = vmatpush.msk.msra.mxu1 %vm750_vm11, %v1078_v25  ;;  %4075 = vmatpush.msk.msra.mxu0 %vm750_vm11, %v1077_v11 }
 0x23a   :  { %4061 = vmatpush.msk.msra.mxu2 %vm750_vm11, %v719_v35  ;;  %2626 = vrot.lane.b32.xlu2 %v4552_v7, %s4310_s0 }
 0x23b   :  { %4062 = vmatmul.msk.f32.vlgmr.msra.gmra.mxu2 %vm746_vm14, %v676_v2  ;;  %4067 = vmatmul.msk.f32.vlgmr.msrb.gmra.mxu0 %vm746_vm14, %v4065_v36 }
 0x23c   :  { %4070 = vmatpush.msk.msrb.mxu2 %vm750_vm11, %v958_v39  ;;  %2379 = vrot.lane.b32.xlu1 %v4536_v58, %s4309_s10  ;;  %v4791_v42 = vpop.permute.xlu2 %1443  ;;  %v688_v43 = vpop.permute.xlu1 %687 }
 0x23d   :  { %2628 = vrot.lane.b32.xlu0 %v4560_v10, %s4310_s0  ;;  %4069 = vmatmul.msk.f32.vlgmr.msrb.gmra.mxu1 %vm746_vm14, %v4065_v36  ;;  %v691_v46 = vsel %vm5590_vm4, %v686_v18, %v688_v43  ;;  %v947_v47 = vpop.permute.xlu0 %946  ;;  %vm4892_vm4 = vcmp.le.s32.totalorder %v40_v41, 14 }
 0x23e   :  { %4079 = vmatpush.msk.msra.mxu2 %vm750_vm11, %v1079_v40  ;;  %v708_v48 = vsel %vm4664_vm12, %v691_v46, 0.0  ;;  %v950_v49 = vsel %vm5589_vm3, %v945_v54, %v947_v47 }
 0x23f   :  { %v720_v50 = vsel %vm5595_vm13, %v708_v48, 0.0  ;;  %v959_v55 = vsel %vm5595_vm13, %v950_v49, 0.0 }
 0x240   :  { %4063 = vmatpush.msk.msra.mxu3 %vm750_vm11, %v720_v50 }
 0x241   :  { %4064 = vmatmul.msk.f32.vlgmr.msra.gmra.mxu3 %vm746_vm14, %v676_v2 }
 0x242   :  { %4072 = vmatpush.msk.msrb.mxu3 %vm750_vm11, %v959_v55  ;;  %2754 = vrot.lane.b32.xlu2 %v4520_v31, %s4310_s0 }
 0x243   :  { %4071 = vmatmul.msk.f32.vlgmr.msrb.gmra.mxu2 %vm746_vm14, %v4065_v36  ;;  %4076 = vmatmul.msk.f32.vlgmr.msra.gmra.mxu0 %vm746_vm14, %v4074_v51 }
 0x244   :  { %2503 = vrot.lane.b32.xlu1 %v4510_v29, %s4309_s10  ;;  %v4817_v54 = vpop.permute.xlu2 %1441  ;;  %v1068_v56 = vpop.permute.xlu1 %1067 }
 0x245   :  { %2624 = vrot.lane.b32.xlu0 %v4538_v59, %s4310_s0  ;;  %4078 = vmatmul.msk.f32.vlgmr.msra.gmra.mxu1 %vm746_vm14, %v4074_v51  ;;  %v1071_v60 = vsel %vm5589_vm3, %v4717_v53, %v1068_v56  ;;  %v1183_v62 = vpop.permute.xlu0 %1182  ;;  %v4083_v53 = vld [vmem:[%s5584_s4 + $0x8] sm:$0xf]  ;;  %vm4858_vm3 = vcmp.le.s32.totalorder %v39_v24, 14  ;;  %v1449_v47 = vsel %vm5591_vm2, %v4817_v54, %v4791_v42 }
 0x246   :  { %v1080_v63 = vsel %vm5595_vm13, %v1071_v60, 0.0  ;;  %v1191_v4 = vsel %vm5592_vm15, %v1183_v62, %v4709_v52  ;;  %v1198_v17 = vsel %vm5592_vm15, 0.0, %v1183_v62  ;;  %v1458_v62 = vsel %vm4622_vm6, %v1449_v47, 0.0 }
 0x247   :  { %v1208_v0 = vsel %vm4821_vm0, %v1191_v4, 0.0  ;;  %4081 = vmatpush.msk.msra.mxu3 %vm750_vm11, %v1080_v63  ;;  %v1207_v1 = vsel %vm4830_vm1, %v1198_v17, 0.0 }
 0x248   :  { %v1212_v13 = vsel %vm5596_vm8, %v1208_v0, 0.0  ;;  %v1211_v2 = vsel %vm5597_vm9, %v1207_v1, 0.0 }
 0x249   :  { %4086 = vmatpush.msk.msrb.mxu1 %vm750_vm11, %v1212_v13  ;;  %4073 = vmatmul.msk.f32.vlgmr.msrb.gmra.mxu3 %vm746_vm14, %v4065_v36  ;;  %v4092_v36 = vld [vmem:[%s5583_s5 + $0x8] sm:$0xf] }
 0x24a   :  { %4084 = vmatpush.msk.msrb.mxu0 %vm750_vm11, %v1211_v2  ;;  %2748 = vrot.lane.b32.xlu2 %v4508_v28, %s4310_s0 }
 0x24b   :  { %4080 = vmatmul.msk.f32.vlgmr.msra.gmra.mxu2 %vm746_vm14, %v4074_v51  ;;  %4085 = vmatmul.msk.f32.vlgmr.msrb.gmra.mxu0 %vm746_vm14, %v4083_v53 }
 0x24c   :  { %2752 = vrot.lane.b32.xlu1 %v4514_v30, %s4310_s0  ;;  %v4868_v5 = vpop.permute.xlu2 %1568  ;;  %v1319_v6 = vpop.permute.xlu1 %1318 }
 0x24d   :  { %2622 = vrot.lane.b32.xlu0 %v4536_v58, %s4310_s0  ;;  %4087 = vmatmul.msk.f32.vlgmr.msrb.gmra.mxu1 %vm746_vm14, %v4083_v53  ;;  %v1325_v16 = vsel %vm5592_vm15, %v1319_v6, %v4750_v8  ;;  %v1187_v24 = vpop.permute.xlu0 %1186 }
 0x24e   :  { %v1334_v9 = vsel %vm4858_vm3, %v1325_v16, 0.0  ;;  %v1192_v11 = vsel %vm5592_vm15, %v4709_v52, %v1187_v24  ;;  %v5630_v52 = vmov 0  ;;  %v4110_v16 = vld [vmem:[%s5583_s5 + $0xc] sm:$0xf] }
 0x24f   :  { %v1209_v12 = vsel %vm4858_vm3, %v1192_v11, 0.0  ;;  %v1338_v15 = vsel %vm5593_vm10, %v1334_v9, 0.0  ;;  %v5631_v52 = vsel %vm4892_vm4, 4294967295, %v5630_v52 }
 0x250   :  { %v1213_v18 = vsel %vm5593_vm10, %v1209_v12, 0.0  ;;  %5632 = vst [vmem:[#allocation5_spill] sm:$0xff] %v5631_v52  ;;  %vm5611_vm10 = vcmp.le.s32.totalorder %v4600_v14, 14 }
 0x251   :  { %4088 = vmatpush.msk.msrb.mxu2 %vm750_vm11, %v1213_v18  ;;  %4082 = vmatmul.msk.f32.vlgmr.msra.gmra.mxu3 %vm746_vm14, %v4074_v51  ;;  %v1456_v51 = vsel %vm5591_vm2, 0.0, %v4817_v54 }
 0x252   :  { %v1457_v54 = vsel %vm4609_vm5, %v1456_v51, 0.0 }
 0x253   :  { %4089 = vmatmul.msk.f32.vlgmr.msrb.gmra.mxu2 %vm746_vm14, %v4083_v53 }
 0x254   :  { %4097 = vmatpush.msk.msra.mxu2 %vm750_vm11, %v1338_v15  ;;  %2750 = vrot.lane.b32.xlu1 %v4510_v29, %s4310_s0  ;;  %v4898_v21 = vpop.permute.xlu2 %2005  ;;  %v1189_v22 = vpop.permute.xlu1 %1188 }
 0x255   :  { %2874 = vperm.xlu0 %4300, %v2871_v19   ;;  %v1193_v23 = vsel %vm5592_vm15, %v1187_v24, %v1189_v22  ;;  %v1323_v25 = vpop.permute.xlu0 %1322 }
 0x256   :  { %v1210_v34 = vsel %vm4892_vm4, %v1193_v23, 0.0  ;;  %v1326_v37 = vsel %vm5592_vm15, %v4750_v8, %v1323_v25 }
 0x257   :  { %v1214_v41 = vsel %vm5595_vm13, %v1210_v34, 0.0  ;;  %v1335_v35 = vsel %vm4892_vm4, %v1326_v37, 0.0 }
 0x258   :  { %v1339_v38 = vsel %vm5595_vm13, %v1335_v35, 0.0  ;;  %4090 = vmatpush.msk.msrb.mxu3 %vm750_vm11, %v1214_v41  ;;  %vm5610_vm13 = vcmp.le.s32.totalorder %v4618_v26, 14 }
 0x259   :  { %4091 = vmatmul.msk.f32.vlgmr.msrb.gmra.mxu3 %vm746_vm14, %v4083_v53 }
 0x25a   :  { %4099 = vmatpush.msk.msra.mxu3 %vm750_vm11, %v1339_v38 }
 0x25b   :  { %4098 = vmatmul.msk.f32.vlgmr.msra.gmra.mxu2 %vm746_vm14, %v4092_v36 }
 0x25c   :  { %v4918_v8 = vpop.permute.xlu2 %2122  ;;  %v1317_v39 = vpop.permute.xlu1 %1316 }
 0x25d   :  { %v1324_v40 = vsel %vm5592_vm15, %v1317_v39, %v1319_v6  ;;  %v1331_v43 = vsel %vm5592_vm15, 0.0, %v1317_v39  ;;  %v1446_v46 = vpop.permute.xlu0 %1445  ;;  %vm5598_vm15 = vcmask 924672  }
 0x25e   :  { %v1332_v48 = vsel %vm4830_vm1, %v1331_v43, 0.0  ;;  %v1333_v49 = vsel %vm4821_vm0, %v1324_v40, 0.0  ;;  %v1450_v50 = vsel %vm5591_vm2, %v4791_v42, %v1446_v46  ;;  %v4101_v42 = vld [vmem:[%s5584_s4 + $0xc] sm:$0xf]  ;;  %v4137_v43 = vld [vmem:[%s5584_s4 + $0x14] sm:$0xf] }
 0x25f   :  { %v1336_v55 = vsel %vm5597_vm9, %v1332_v48, 0.0  ;;  %v1337_v56 = vsel %vm5596_vm8, %v1333_v49, 0.0  ;;  %v1459_v60 = vsel %vm4630_vm7, %v1450_v50, 0.0  ;;  %vm5608_vm8 = vcmask 916480  }
 0x260   :  { %4106 = vmatpush.msk.msrb.mxu2 %vm750_vm11, %v1459_v60  ;;  %4093 = vmatpush.msk.msra.mxu0 %vm750_vm11, %v1336_v55  ;;  %vm5609_vm9 = vcmp.le.s32.totalorder %v4626_v32, 14 }
 0x261   :  { %4095 = vmatpush.msk.msra.mxu1 %vm750_vm11, %v1337_v56  ;;  %4094 = vmatmul.msk.f32.vlgmr.msra.gmra.mxu0 %vm746_vm14, %v4092_v36 }
 0x262   :  { %4096 = vmatmul.msk.f32.vlgmr.msra.gmra.mxu1 %vm746_vm14, %v4092_v36  ;;  %4100 = vmatmul.msk.f32.vlgmr.msra.gmra.mxu3 %vm746_vm14, %v4092_v36 }
 0x263   :  { %4102 = vmatpush.msk.msrb.mxu0 %vm750_vm11, %v1457_v54  ;;  %4104 = vmatpush.msk.msrb.mxu1 %vm750_vm11, %v1458_v62 }
 0x264   :  { %4107 = vmatmul.msk.f32.vlgmr.msrb.gmra.mxu2 %vm746_vm14, %v4101_v42  ;;  %v1448_v63 = vpop.permute.xlu1 %1447  ;;  %v4955_v4 = vpop.permute.xlu2 %1883 }
 0x265   :  { %v1451_v17 = vsel %vm5591_vm2, %v1446_v46, %v1448_v63  ;;  %v1565_v0 = vpop.permute.xlu0 %1564 }
 0x266   :  { %v1460_v1 = vsel %vm4664_vm12, %v1451_v17, 0.0 }
 0x267   :  { %4108 = vmatpush.msk.msrb.mxu3 %vm750_vm11, %v1460_v1 }
 0x269   :  { %4103 = vmatmul.msk.f32.vlgmr.msrb.gmra.mxu0 %vm746_vm14, %v4101_v42 }
 0x26a   :  { %4105 = vmatmul.msk.f32.vlgmr.msrb.gmra.mxu1 %vm746_vm14, %v4101_v42  ;;  %4109 = vmatmul.msk.f32.vlgmr.msrb.gmra.mxu3 %vm746_vm14, %v4101_v42 }
 0x26c   :  { %v1567_v13 = vpop.permute.xlu1 %1566  ;;  %v2121_v12 = vpop.permute.xlu2 %2120 }
 0x26d   :  { %v1571_v53 = vsel %vm5591_vm2, %v1565_v0, %v1567_v13  ;;  %v1572_v2 = vsel %vm5591_vm2, %v1567_v13, %v4868_v5  ;;  %v1563_v6 = vpop.permute.xlu0 %1562  ;;  %v2129_v35 = vsel %vm5598_vm15, %v2121_v12, %v4918_v8 }
 0x26e   :  { %v1580_v24 = vsel %vm4630_vm7, %v1571_v53, 0.0  ;;  %v1581_v9 = vsel %vm4664_vm12, %v1572_v2, 0.0  ;;  %v1570_v11 = vsel %vm5591_vm2, %v1563_v6, %v1565_v0  ;;  %v1577_v15 = vsel %vm5591_vm2, 0.0, %v1563_v6  ;;  %v4146_v0 = vld [vmem:[%s5583_s5 + $0x14] sm:$0xf] }
 0x26f   :  { %v1579_v18 = vsel %vm4622_vm6, %v1570_v11, 0.0  ;;  %4115 = vmatpush.msk.msra.mxu2 %vm750_vm11, %v1580_v24  ;;  %4117 = vmatpush.msk.msra.mxu3 %vm750_vm11, %v1581_v9  ;;  %v1578_v5 = vsel %vm4609_vm5, %v1577_v15, 0.0  ;;  %vm5594_vm2 = vcmask 1039360   ;;  %v2137_v56 = vsel %vm4609_vm5, %v2129_v35, 0.0 }
 0x270   :  { %4113 = vmatpush.msk.msra.mxu1 %vm750_vm11, %v1579_v18  ;;  %4116 = vmatmul.msk.f32.vlgmr.msra.gmra.mxu2 %vm746_vm14, %v4110_v16  ;;  %v2014_v25 = vsel %vm5594_vm2, %v4898_v21, 0.0  ;;  %v2149_v42 = vsel %vm5611_vm10, %v2137_v56, 0.0  ;;  %v4155_v18 = vld [vmem:[%s5584_s4 + $0x18] sm:$0xf] }
 0x271   :  { %4111 = vmatpush.msk.msra.mxu0 %vm750_vm11, %v1578_v5  ;;  %4124 = vmatpush.msk.msrb.mxu2 %vm750_vm11, %v4552_v7  ;;  %v2018_v37 = vsel %vm4892_vm4, %v2014_v25, 0.0 }
 0x272   :  { %4122 = vmatpush.msk.msrb.mxu1 %vm750_vm11, %v4538_v59  ;;  %4126 = vmatpush.msk.msrb.mxu3 %vm750_vm11, %v4560_v10  ;;  %v4119_v59 = vld [vmem:[%s5584_s4 + $0x10] sm:$0xf] }
 0x273   :  { %4120 = vmatpush.msk.msrb.mxu0 %vm750_vm11, %v4536_v58  ;;  %4114 = vmatmul.msk.f32.vlgmr.msra.gmra.mxu1 %vm746_vm14, %v4110_v16  ;;  %v1893_v58 = vsel %vm5594_vm2, %v4955_v4, 0.0 }
 0x274   :  { %4112 = vmatmul.msk.f32.vlgmr.msra.gmra.mxu0 %vm746_vm14, %v4110_v16  ;;  %4118 = vmatmul.msk.f32.vlgmr.msra.gmra.mxu3 %vm746_vm14, %v4110_v16  ;;  %v2004_v19 = vpop.permute.xlu1 %2003  ;;  %v5010_v7 = vpop.permute.xlu2 %2126 }
 0x275   :  { %v1880_v22 = vpop.permute.xlu0 %1879  ;;  %4135 = vmatpush.msk.msra.mxu3 %vm750_vm11, %v4520_v31  ;;  %4129 = vmatpush.msk.msra.mxu0 %vm750_vm11, %v4508_v28  ;;  %v1897_v31 = vsel %vm4892_vm4, %v1893_v58, 0.0  ;;  %v2009_v36 = vsel %vm5594_vm2, %v2004_v19, %v4898_v21  ;;  %v2136_v46 = vsel %vm5598_vm15, %v5010_v7, 0.0 }
 0x276   :  { %4133 = vmatpush.msk.msra.mxu2 %vm750_vm11, %v4514_v30  ;;  %4131 = vmatpush.msk.msra.mxu1 %vm750_vm11, %v4510_v29  ;;  %v4128_v30 = vld [vmem:[%s5583_s5 + $0x10] sm:$0xf]  ;;  %v2017_v51 = vsel %vm4858_vm3, %v2009_v36, 0.0  ;;  %v2140_v60 = vsel %vm4664_vm12, %v2136_v46, 0.0 }
 0x278   :  { %4125 = vmatmul.msk.f32.vlgmr.msrb.gmra.mxu2 %vm746_vm14, %v4119_v59 }
 0x27b   :  { %4123 = vmatmul.msk.f32.vlgmr.msrb.gmra.mxu1 %vm746_vm14, %v4119_v59 }
 0x27c   :  { %4121 = vmatmul.msk.f32.vlgmr.msrb.gmra.mxu0 %vm746_vm14, %v4119_v59  ;;  %4127 = vmatmul.msk.f32.vlgmr.msrb.gmra.mxu3 %vm746_vm14, %v4119_v59  ;;  %v2000_v28 = vpop.permute.xlu1 %1999  ;;  %v5028_v34 = vpop.permute.xlu2 %2505 }
 0x27d   :  { %4144 = vmatpush.msk.msrb.mxu3 %vm750_vm11, %v1897_v31  ;;  %v1878_v29 = vpop.permute.xlu0 %1877 }
 0x27e   :  { %v1886_v10 = vsel %vm5594_vm2, %v1878_v29, %v1880_v22 }
 0x27f   :  { %v1894_v23 = vsel %vm4830_vm1, %v1886_v10, 0.0  ;;  %v4164_v10 = vld [vmem:[%s5583_s5 + $0x18] sm:$0xf] }
 0x280   :  { %4138 = vmatpush.msk.msrb.mxu0 %vm750_vm11, %v1894_v23  ;;  %4134 = vmatmul.msk.f32.vlgmr.msra.gmra.mxu2 %vm746_vm14, %v4128_v30 }
 0x283   :  { %4132 = vmatmul.msk.f32.vlgmr.msra.gmra.mxu1 %vm746_vm14, %v4128_v30 }
 0x284   :  { %4130 = vmatmul.msk.f32.vlgmr.msra.gmra.mxu0 %vm746_vm14, %v4128_v30  ;;  %4136 = vmatmul.msk.f32.vlgmr.msra.gmra.mxu3 %vm746_vm14, %v4128_v30  ;;  %v1882_v41 = vpop.permute.xlu1 %1881  ;;  %v2386_v63 = vpop.permute.xlu2 %2385 }
 0x285   :  { %4153 = vmatpush.msk.msra.mxu3 %vm750_vm11, %v2018_v37  ;;  %v1887_v38 = vsel %vm5594_vm2, %v1880_v22, %v1882_v41  ;;  %v1888_v39 = vsel %vm5594_vm2, %v1882_v41, %v4955_v4  ;;  %v2002_v40 = vpop.permute.xlu0 %2001  ;;  %v2395_v58 = vsel %vm5608_vm8, %v2386_v63, 0.0 }
 0x286   :  { %v1895_v47 = vsel %vm4821_vm0, %v1887_v38, 0.0  ;;  %v1896_v21 = vsel %vm4858_vm3, %v1888_v39, 0.0  ;;  %v2007_v48 = vsel %vm5594_vm2, %v2000_v28, %v2002_v40  ;;  %v2008_v49 = vsel %vm5594_vm2, %v2002_v40, %v2004_v19  ;;  %v5150_v39 = vpop.f32.mrf.mxu0 }
 0x287   :  { %v2015_v50 = vsel %vm4830_vm1, %v2007_v48, 0.0  ;;  %4140 = vmatpush.msk.msrb.mxu1 %vm750_vm11, %v1895_v47  ;;  %4142 = vmatpush.msk.msrb.mxu2 %vm750_vm11, %v1896_v21  ;;  %v2016_v55 = vsel %vm4821_vm0, %v2008_v49, 0.0  ;;  %vm5612_vm2 = vcmp.le.s32.totalorder %v4660_v44, 14  ;;  %v800_v21 = vpop.f32.mrf.mxu1  ;;  %v4173_v48 = vld [vmem:[%s5584_s4 + $0x1c] sm:$0xf] }
 0x288   :  { %4147 = vmatpush.msk.msra.mxu0 %vm750_vm11, %v2015_v50  ;;  %4143 = vmatmul.msk.f32.vlgmr.msrb.gmra.mxu2 %vm746_vm14, %v4137_v43  ;;  %v2152_v54 = vsel %vm5612_vm2, %v2140_v60, 0.0  ;;  %v2399_v31 = vsel %vm5612_vm2, %v2395_v58, 0.0  ;;  %v4191_v58 = vld [vmem:[%s5584_s4 + $0x20] sm:$0xf] }
 0x289   :  { %4149 = vmatpush.msk.msra.mxu1 %vm750_vm11, %v2016_v55  ;;  %4151 = vmatpush.msk.msra.mxu2 %vm750_vm11, %v2017_v51 }
 0x28b   :  { %4141 = vmatmul.msk.f32.vlgmr.msrb.gmra.mxu1 %vm746_vm14, %v4137_v43 }
 0x28c   :  { %4139 = vmatmul.msk.f32.vlgmr.msrb.gmra.mxu0 %vm746_vm14, %v4137_v43  ;;  %4145 = vmatmul.msk.f32.vlgmr.msrb.gmra.mxu3 %vm746_vm14, %v4137_v43  ;;  %v2261_v62 = vpop.permute.xlu1 %2260 }
 0x28d   :  { %4156 = vmatpush.msk.msrb.mxu0 %vm750_vm11, %v2149_v42  ;;  %4162 = vmatpush.msk.msrb.mxu3 %vm750_vm11, %v2152_v54  ;;  %v2269_v4 = vsel %vm5598_vm15, %v2261_v62, 0.0  ;;  %v2259_v17 = vpop.permute.xlu0 %2258 }
 0x28e   :  { %v2273_v1 = vsel %vm4664_vm12, %v2269_v4, 0.0  ;;  %v2264_v53 = vsel %vm5598_vm15, %v2259_v17, %v2261_v62 }
 0x28f   :  { %v2277_v13 = vsel %vm5612_vm2, %v2273_v1, 0.0  ;;  %v2272_v9 = vsel %vm4630_vm7, %v2264_v53, 0.0 }
 0x290   :  { %4152 = vmatmul.msk.f32.vlgmr.msra.gmra.mxu2 %vm746_vm14, %v4146_v0 }
 0x293   :  { %4150 = vmatmul.msk.f32.vlgmr.msra.gmra.mxu1 %vm746_vm14, %v4146_v0 }
 0x294   :  { %4148 = vmatmul.msk.f32.vlgmr.msra.gmra.mxu0 %vm746_vm14, %v4146_v0  ;;  %4154 = vmatmul.msk.f32.vlgmr.msra.gmra.mxu3 %vm746_vm14, %v4146_v0  ;;  %v2125_v2 = vpop.permute.xlu1 %2124 }
 0x295   :  { %4171 = vmatpush.msk.msra.mxu3 %vm750_vm11, %v2277_v13  ;;  %v2130_v6 = vsel %vm5598_vm15, %v4918_v8, %v2125_v2  ;;  %v2131_v16 = vsel %vm5598_vm15, %v2125_v2, %v5010_v7  ;;  %v2257_v24 = vpop.permute.xlu0 %2256  ;;  %v5111_v8 = vpop.permute.xlu2 %2501  ;;  %v2276_v7 = vsel %vm5609_vm9, %v2272_v9, 0.0  ;;  %v4182_v13 = vld [vmem:[%s5583_s5 + $0x1c] sm:$0xf] }
 0x296   :  { %v2138_v11 = vsel %vm4622_vm6, %v2130_v6, 0.0  ;;  %v2139_v12 = vsel %vm4630_vm7, %v2131_v16, 0.0  ;;  %v2263_v15 = vsel %vm5598_vm15, %v2257_v24, %v2259_v17 }
 0x297   :  { %v2150_v5 = vsel %vm5610_vm13, %v2138_v11, 0.0  ;;  %v2151_v19 = vsel %vm5609_vm9, %v2139_v12, 0.0  ;;  %v2271_v22 = vsel %vm4622_vm6, %v2263_v15, 0.0 }
 0x298   :  { %v2275_v59 = vsel %vm5610_vm13, %v2271_v22, 0.0  ;;  %4158 = vmatpush.msk.msrb.mxu1 %vm750_vm11, %v2150_v5  ;;  %4160 = vmatpush.msk.msrb.mxu2 %vm750_vm11, %v2151_v19 }
 0x299   :  { %4161 = vmatmul.msk.f32.vlgmr.msrb.gmra.mxu2 %vm746_vm14, %v4155_v18 }
 0x29a   :  { %4167 = vmatpush.msk.msra.mxu1 %vm750_vm11, %v2275_v59  ;;  %4169 = vmatpush.msk.msra.mxu2 %vm750_vm11, %v2276_v7  ;;  %v840_v7 = vpop.f32.mrf.mxu3 }
 0x29b   :  { %4159 = vmatmul.msk.f32.vlgmr.msrb.gmra.mxu1 %vm746_vm14, %v4155_v18 }
 0x29c   :  { %4157 = vmatmul.msk.f32.vlgmr.msrb.gmra.mxu0 %vm746_vm14, %v4155_v18  ;;  %4163 = vmatmul.msk.f32.vlgmr.msrb.gmra.mxu3 %vm746_vm14, %v4155_v18  ;;  %v2382_v28 = vpop.permute.xlu1 %2381 }
 0x29d   :  { %4180 = vmatpush.msk.msrb.mxu3 %vm750_vm11, %v2399_v31  ;;  %v2255_v29 = vpop.permute.xlu0 %2254  ;;  %v2627_v37 = vpop.permute.xlu2 %2626 }
 0x29e   :  { %v2262_v30 = vsel %vm5598_vm15, %v2255_v29, %v2257_v24  ;;  %vm5607_vm15 = vcmask 908288   ;;  %v5199_v24 = vpop.f32.mrf.mxu2 }
 0x29f   :  { %v2270_v23 = vsel %vm4609_vm5, %v2262_v30, 0.0 }
 0x2a0   :  { %v2274_v25 = vsel %vm5611_vm10, %v2270_v23, 0.0 }
 0x2a1   :  { %4165 = vmatpush.msk.msra.mxu0 %vm750_vm11, %v2274_v25  ;;  %4170 = vmatmul.msk.f32.vlgmr.msra.gmra.mxu2 %vm746_vm14, %v4164_v10 }
 0x2a3   :  { %4168 = vmatmul.msk.f32.vlgmr.msra.gmra.mxu1 %vm746_vm14, %v4164_v10 }
 0x2a4   :  { %4166 = vmatmul.msk.f32.vlgmr.msra.gmra.mxu0 %vm746_vm14, %v4164_v10  ;;  %4172 = vmatmul.msk.f32.vlgmr.msra.gmra.mxu3 %vm746_vm14, %v4164_v10 }
 0x2a5   :  { %v2384_v41 = vpop.permute.xlu1 %2383  ;;  %v2508_v38 = vpop.permute.xlu0 %2507 }
 0x2a6   :  { %v2389_v35 = vsel %vm5608_vm8, %v2382_v28, %v2384_v41  ;;  %v2390_v36 = vsel %vm5608_vm8, %v2384_v41, %v2386_v63  ;;  %v2511_v46 = vsel %vm5608_vm8, %v5028_v34, %v2508_v38  ;;  %v2516_v47 = vsel %vm5608_vm8, %v2508_v38, 0.0  ;;  %v2755_v51 = vpop.permute.xlu2 %2754 }
 0x2a7   :  { %v2397_v40 = vsel %vm5610_vm13, %v2389_v35, 0.0  ;;  %v2398_v43 = vsel %vm5609_vm9, %v2390_v36, 0.0  ;;  %v2519_v49 = vsel %vm5609_vm9, %v2511_v46, 0.0  ;;  %v2520_v50 = vsel %vm5612_vm2, %v2516_v47, 0.0 }
 0x2a8   :  { %4176 = vmatpush.msk.msrb.mxu1 %vm750_vm11, %v2397_v40  ;;  %4178 = vmatpush.msk.msrb.mxu2 %vm750_vm11, %v2398_v43  ;;  %v2763_v55 = vsel %vm5607_vm15, %v2755_v51, 0.0 }
 0x2a9   :  { %4189 = vmatpush.msk.msra.mxu3 %vm750_vm11, %v2520_v50  ;;  %4179 = vmatmul.msk.f32.vlgmr.msrb.gmra.mxu2 %vm746_vm14, %v4173_v48  ;;  %v2767_v63 = vsel %vm4892_vm4, %v2763_v55, 0.0 }
 0x2aa   :  { %4187 = vmatpush.msk.msra.mxu2 %vm750_vm11, %v2519_v49  ;;  %v2771_v16 = vsel %vm5612_vm2, %v2767_v63, 0.0 }
 0x2ab   :  { %4177 = vmatmul.msk.f32.vlgmr.msrb.gmra.mxu1 %vm746_vm14, %v4173_v48 }
 0x2ac   :  { %4181 = vmatmul.msk.f32.vlgmr.msrb.gmra.mxu3 %vm746_vm14, %v4173_v48 }
 0x2ae   :  { %v2380_v56 = vpop.permute.xlu1 %2379  ;;  %v2749_v47 = vpop.permute.xlu2 %2748 }
 0x2af   :  { %v2629_v60 = vpop.permute.xlu0 %2628  ;;  %v2388_v42 = vsel %vm5608_vm8, %v2380_v56, %v2382_v28  ;;  %v875_v1 = vpop.f32.mrf.mxu0 }
 0x2b0   :  { %v2633_v54 = vsel %vm5607_vm15, %v2627_v37, %v2629_v60  ;;  %v2638_v62 = vsel %vm5607_vm15, %v2629_v60, 0.0  ;;  %v2396_v4 = vsel %vm5611_vm10, %v2388_v42, 0.0  ;;  %v876_v30 = vadd.f32 %v875_v1, %v5150_v39  ;;  %v4200_v39 = vld [vmem:[%s5583_s5 + $0x20] sm:$0xf] }
 0x2b1   :  { %v2641_v17 = vsel %vm4858_vm3, %v2633_v54, 0.0  ;;  %v2642_v0 = vsel %vm4892_vm4, %v2638_v62, 0.0  ;;  %4174 = vmatpush.msk.msrb.mxu0 %vm750_vm11, %v2396_v4  ;;  %v895_v6 = vpop.f32.mrf.mxu1  ;;  %4188 = vmatmul.msk.f32.vlgmr.msra.gmra.mxu2 %vm746_vm14, %v4182_v13 }
 0x2b2   :  { %v2645_v53 = vsel %vm5609_vm9, %v2641_v17, 0.0  ;;  %v2646_v2 = vsel %vm5612_vm2, %v2642_v0, 0.0  ;;  %4175 = vmatmul.msk.f32.vlgmr.msrb.gmra.mxu0 %vm746_vm14, %v4173_v48  ;;  %v896_v10 = vadd.f32 %v895_v6, %v800_v21 }
 0x2b3   :  { %4196 = vmatpush.msk.msrb.mxu2 %vm750_vm11, %v2645_v53  ;;  %4198 = vmatpush.msk.msrb.mxu3 %vm750_vm11, %v2646_v2 }
 0x2b4   :  { %4190 = vmatmul.msk.f32.vlgmr.msra.gmra.mxu3 %vm746_vm14, %v4182_v13 }
 0x2b5   :  { %4207 = vmatpush.msk.msra.mxu3 %vm750_vm11, %v2771_v16 }
 0x2b6   :  { %v2504_v9 = vpop.permute.xlu1 %2503 }
 0x2b7   :  { %v2625_v11 = vpop.permute.xlu0 %2624  ;;  %v2509_v12 = vsel %vm5608_vm8, %v5111_v8, %v2504_v9  ;;  %v2510_v15 = vsel %vm5608_vm8, %v2504_v9, %v5028_v34  ;;  %vm5634_vm8 = vcmask 130048  }
 0x2b8   :  { %v2632_v18 = vsel %vm5607_vm15, %v2625_v11, %v2627_v37  ;;  %v2517_v5 = vsel %vm5611_vm10, %v2509_v12, 0.0  ;;  %v2518_v19 = vsel %vm5610_vm13, %v2510_v15, 0.0  ;;  %v992_v59 = vpop.f32.mrf.mxu0 }
 0x2b9   :  { %v2640_v22 = vsel %vm4821_vm0, %v2632_v18, 0.0  ;;  %4183 = vmatpush.msk.msra.mxu0 %vm750_vm11, %v2517_v5  ;;  %4185 = vmatpush.msk.msra.mxu1 %vm750_vm11, %v2518_v19  ;;  %v1055_v43 = vadd.f32 %v992_v59, %v876_v30 }
 0x2ba   :  { %v2644_v8 = vsel %vm5610_vm13, %v2640_v22, 0.0  ;;  %v1012_v34 = vpop.f32.mrf.mxu1  ;;  %4184 = vmatmul.msk.f32.vlgmr.msra.gmra.mxu0 %vm746_vm14, %v4182_v13  ;;  %4186 = vmatmul.msk.f32.vlgmr.msra.gmra.mxu1 %vm746_vm14, %v4182_v13 }
 0x2bb   :  { %4194 = vmatpush.msk.msrb.mxu1 %vm750_vm11, %v2644_v8  ;;  %4197 = vmatmul.msk.f32.vlgmr.msrb.gmra.mxu2 %vm746_vm14, %v4191_v58  ;;  %v1056_v46 = vadd.f32 %v1012_v34, %v896_v10 }
 0x2bc   :  { %4199 = vmatmul.msk.f32.vlgmr.msrb.gmra.mxu3 %vm746_vm14, %v4191_v58 }
 0x2be   :  { %v915_v31 = vpop.f32.mrf.mxu2  ;;  %v2753_v28 = vpop.permute.xlu1 %2752 }
 0x2bf   :  { %v2623_v29 = vpop.permute.xlu0 %2622  ;;  %v2758_v23 = vsel %vm5607_vm15, %v2753_v28, %v2755_v51  ;;  %v916_v53 = vadd.f32 %v915_v31, %v5199_v24 }
 0x2c0   :  { %v2631_v25 = vsel %vm5607_vm15, %v2623_v29, %v2625_v11  ;;  %v2766_v37 = vsel %vm4858_vm3, %v2758_v23, 0.0  ;;  %v1113_v35 = vpop.f32.mrf.mxu0 }
 0x2c1   :  { %v2639_v41 = vsel %vm4830_vm1, %v2631_v25, 0.0  ;;  %v2770_v36 = vsel %vm5609_vm9, %v2766_v37, 0.0  ;;  %v1176_v50 = vadd.f32 %v1113_v35, %v1055_v43  ;;  %vm5635_vm9 = vmmov %vm5634_vm8 }
 0x2c2   :  { %v2643_v38 = vsel %vm5611_vm10, %v2639_v41, 0.0  ;;  %v1133_v40 = vpop.f32.mrf.mxu1  ;;  %4195 = vmatmul.msk.f32.vlgmr.msrb.gmra.mxu1 %vm746_vm14, %v4191_v58  ;;  %4205 = vmatpush.msk.msra.mxu2 %vm750_vm11, %v2770_v36 }
 0x2c3   :  { %4192 = vmatpush.msk.msrb.mxu0 %vm750_vm11, %v2643_v38  ;;  %4206 = vmatmul.msk.f32.vlgmr.msra.gmra.mxu2 %vm746_vm14, %v4200_v39  ;;  %v1177_v51 = vadd.f32 %v1133_v40, %v1056_v46 }
 0x2c4   :  { %4193 = vmatmul.msk.f32.vlgmr.msrb.gmra.mxu0 %vm746_vm14, %v4191_v58  ;;  %4208 = vmatmul.msk.f32.vlgmr.msra.gmra.mxu3 %vm746_vm14, %v4200_v39  ;;  %v935_v21 = vpop.f32.mrf.mxu3 }
 0x2c5   :  { %v936_v9 = vadd.f32 %v935_v21, %v840_v7 }
 0x2c6   :  { %v1032_v48 = vpop.f32.mrf.mxu2  ;;  %v2751_v49 = vpop.permute.xlu1 %2750 }
 0x2c7   :  { %v2756_v55 = vsel %vm5607_vm15, %v2749_v47, %v2751_v49  ;;  %v2757_v56 = vsel %vm5607_vm15, %v2751_v49, %v2753_v28  ;;  %v1057_v2 = vadd.f32 %v1032_v48, %v916_v53  ;;  %vm5633_vm15 = vcmask 138240  }
 0x2c8   :  { %v2764_v60 = vsel %vm4830_vm1, %v2756_v55, 0.0  ;;  %v2765_v42 = vsel %vm4821_vm0, %v2757_v56, 0.0  ;;  %v1247_v54 = vpop.f32.mrf.mxu0 }
 0x2c9   :  { %v2768_v62 = vsel %vm5611_vm10, %v2764_v60, 0.0  ;;  %v2769_v63 = vsel %vm5610_vm13, %v2765_v42, 0.0  ;;  %v1310_v4 = vadd.f32 %v1247_v54, %v1176_v50  ;;  %vm5636_vm13 = vcmp.ge.s32.totalorder %v4600_v14, 1 }
 0x2ca   :  { %v1267_v17 = vpop.f32.mrf.mxu1  ;;  %4201 = vmatpush.msk.msra.mxu0 %vm750_vm11, %v2768_v62  ;;  %4203 = vmatpush.msk.msra.mxu1 %vm750_vm11, %v2769_v63  ;;  %vm5637_vm10 = vcmp.ge.s32.totalorder %v4618_v26, 1 }
 0x2cb   :  { %v1311_v0 = vadd.f32 %v1267_v17, %v1177_v51  ;;  %4204 = vmatmul.msk.f32.vlgmr.msra.gmra.mxu1 %vm746_vm14, %v4200_v39 }
 0x2cc   :  { %4202 = vmatmul.msk.f32.vlgmr.msra.gmra.mxu0 %vm746_vm14, %v4200_v39  ;;  %v1052_v1 = vpop.f32.mrf.mxu3 }
 0x2cd   :  { %v1058_v15 = vadd.f32 %v1052_v1, %v936_v9 }
 0x2ce   :  { %v1153_v13 = vpop.f32.mrf.mxu2 }
 0x2cf   :  { %v1178_v6 = vadd.f32 %v1153_v13, %v1057_v2 }
 0x2d4   :  { %v1173_v16 = vpop.f32.mrf.mxu3 }
 0x2d5   :  { %v1179_v18 = vadd.f32 %v1173_v16, %v1058_v15 }
 0x2d6   :  { %v1287_v11 = vpop.f32.mrf.mxu2 }
 0x2d7   :  { %v1312_v12 = vadd.f32 %v1287_v11, %v1178_v6 }
 0x2dc   :  { %v1307_v5 = vpop.f32.mrf.mxu3 }
 0x2dd   :  { %v1313_v19 = vadd.f32 %v1307_v5, %v1179_v18 }
 0x2de   :  { %v1412_v22 = vpop.f32.mrf.mxu2  ;;  %v1372_v58 = vpop.f32.mrf.mxu0 }
 0x2df   :  { %v1437_v59 = vadd.f32 %v1412_v22, %v1312_v12  ;;  %v1435_v8 = vadd.f32 %v1372_v58, %v1310_v4  ;;  %v1392_v34 = vpop.f32.mrf.mxu1 }
 0x2e0   :  { %v1436_v28 = vadd.f32 %v1392_v34, %v1311_v0 }
 0x2e5   :  { %v1432_v29 = vpop.f32.mrf.mxu3 }
 0x2e6   :  { %v1438_v30 = vadd.f32 %v1432_v29, %v1313_v19  ;;  %v1493_v10 = vpop.f32.mrf.mxu0 }
 0x2e7   :  { %v1533_v24 = vpop.f32.mrf.mxu2  ;;  %v1556_v31 = vadd.f32 %v1493_v10, %v1435_v8  ;;  %v1513_v23 = vpop.f32.mrf.mxu1 }
 0x2e8   :  { %v1558_v25 = vadd.f32 %v1533_v24, %v1437_v59  ;;  %v1557_v7 = vadd.f32 %v1513_v23, %v1436_v28 }
 0x2ed   :  { %v1553_v37 = vpop.f32.mrf.mxu3 }
 0x2ee   :  { %v1559_v41 = vadd.f32 %v1553_v37, %v1438_v30 }
 0x2f0   :  { %v1634_v36 = vpop.f32.mrf.mxu1 }
 0x2f1   :  { %v1614_v35 = vpop.f32.mrf.mxu0  ;;  %v1678_v18 = vadd.f32 %v1634_v36, %v1557_v7 }
 0x2f2   :  { %v1677_v15 = vadd.f32 %v1614_v35, %v1556_v31 }
 0x2f3   :  { %v1654_v38 = vpop.f32.mrf.mxu2 }
 0x2f4   :  { %v1679_v30 = vadd.f32 %v1654_v38, %v1558_v25 }
 0x2f7   :  { %v1674_v39 = vpop.f32.mrf.mxu3 }
 0x2f8   :  { %v1731_v43 = vpop.f32.mrf.mxu1  ;;  %v1680_v34 = vadd.f32 %v1674_v39, %v1559_v41 }
 0x2f9   :  { %v1711_v40 = vpop.f32.mrf.mxu0  ;;  %v1775_v22 = vadd.f32 %v1731_v43, %v1678_v18 }
 0x2fa   :  { %v1774_v19 = vadd.f32 %v1711_v40, %v1677_v15 }
 0x2fb   :  { %v1751_v46 = vpop.f32.mrf.mxu2 }
 0x2fc   :  { %v1776_v37 = vadd.f32 %v1751_v46, %v1679_v30 }
 0x2ff   :  { %v1771_v47 = vpop.f32.mrf.mxu3 }
 0x300   :  { %v1828_v48 = vpop.f32.mrf.mxu1  ;;  %v1777_v10 = vadd.f32 %v1771_v47, %v1680_v34 }
 0x301   :  { %v1808_v21 = vpop.f32.mrf.mxu0  ;;  %v1872_v29 = vadd.f32 %v1828_v48, %v1775_v22 }
 0x302   :  { %v1871_v28 = vadd.f32 %v1808_v21, %v1774_v19 }
 0x303   :  { %v1848_v49 = vpop.f32.mrf.mxu2 }
 0x304   :  { %v1873_v33 = vadd.f32 %v1848_v49, %v1776_v37 }
 0x307   :  { %v1868_v50 = vpop.f32.mrf.mxu3 }
 0x308   :  { %v1950_v55 = vpop.f32.mrf.mxu1  ;;  %v1874_v52 = vadd.f32 %v1868_v50, %v1777_v10 }
 0x309   :  { %v1930_v51 = vpop.f32.mrf.mxu0  ;;  %v1994_v23 = vadd.f32 %v1950_v55, %v1872_v29 }
 0x30a   :  { %v1993_v24 = vadd.f32 %v1930_v51, %v1871_v28 }
 0x30b   :  { %v1970_v56 = vpop.f32.mrf.mxu2 }
 0x30c   :  { %v1995_v40 = vadd.f32 %v1970_v56, %v1873_v33 }
 0x30f   :  { %v1990_v60 = vpop.f32.mrf.mxu3 }
 0x310   :  { %v2071_v42 = vpop.f32.mrf.mxu1  ;;  %v1996_v31 = vadd.f32 %v1990_v60, %v1874_v52 }
 0x311   :  { %v2051_v54 = vpop.f32.mrf.mxu0  ;;  %v2115_v61 = vadd.f32 %v2071_v42, %v1994_v23 }
 0x312   :  { %v2114_v57 = vadd.f32 %v2051_v54, %v1993_v24 }
 0x313   :  { %v2091_v62 = vpop.f32.mrf.mxu2 }
 0x314   :  { %v2116_v25 = vadd.f32 %v2091_v62, %v1995_v40 }
 0x317   :  { %v2111_v63 = vpop.f32.mrf.mxu3 }
 0x318   :  { %v2205_v4 = vpop.f32.mrf.mxu1  ;;  %v2117_v18 = vadd.f32 %v2111_v63, %v1996_v31  ;;  %v4209_v31 = vld [vmem:[%s5587_s7 + $0x4] sm:$0xf] }
 0x319   :  { %v2185_v0 = vpop.f32.mrf.mxu0  ;;  %v2249_v35 = vadd.f32 %v2205_v4, %v2115_v61  ;;  %v2875_v4 = vpop.permute.xlu0 %2874 }
 0x31a   :  { %v2248_v7 = vadd.f32 %v2185_v0, %v2114_v57 }
 0x31c   :  { %v2225_v17 = vpop.f32.mrf.mxu2 }
 0x31d   :  { %v2250_v46 = vadd.f32 %v2225_v17, %v2116_v25 }
 0x31f   :  { %v2245_v1 = vpop.f32.mrf.mxu3 }
 0x320   :  { %v2330_v53 = vpop.f32.mrf.mxu1  ;;  %v2251_v38 = vadd.f32 %v2245_v1, %v2117_v18 }
 0x321   :  { %v2310_v2 = vpop.f32.mrf.mxu0  ;;  %v2374_v39 = vadd.f32 %v2330_v53, %v2249_v35 }
 0x322   :  { %v2373_v41 = vadd.f32 %v2310_v2, %v2248_v7 }
 0x324   :  { %v2350_v13 = vpop.f32.mrf.mxu2 }
 0x325   :  { %v2375_v49 = vadd.f32 %v2350_v13, %v2250_v46 }
 0x327   :  { %v2370_v6 = vpop.f32.mrf.mxu3 }
 0x328   :  { %v2452_v12 = vpop.f32.mrf.mxu1  ;;  %v2376_v50 = vadd.f32 %v2370_v6, %v2251_v38 }
 0x329   :  { %v2496_v47 = vadd.f32 %v2452_v12, %v2374_v39 }
 0x32c   :  { %v2472_v16 = vpop.f32.mrf.mxu2 }
 0x32d   :  { %v2497_v60 = vadd.f32 %v2472_v16, %v2375_v49 }
 0x32f   :  { %v2492_v9 = vpop.f32.mrf.mxu3  ;;  %v2432_v11 = vpop.f32.mrf.mxu0 }
 0x330   :  { %v2495_v48 = vadd.f32 %v2432_v11, %v2373_v41  ;;  %v2498_v52 = vadd.f32 %v2492_v9, %v2376_v50 }
 0x334   :  { %v2593_v5 = vpop.f32.mrf.mxu2 }
 0x335   :  { %v2618_v0 = vadd.f32 %v2593_v5, %v2497_v60 }
 0x337   :  { %v2613_v59 = vpop.f32.mrf.mxu3  ;;  %v2553_v58 = vpop.f32.mrf.mxu0 }
 0x338   :  { %v2573_v8 = vpop.f32.mrf.mxu1  ;;  %v2616_v51 = vadd.f32 %v2553_v58, %v2495_v48  ;;  %v2619_v42 = vadd.f32 %v2613_v59, %v2498_v52  ;;  %v3961_v59 = vld [vmem:[%s5586_s8] sm:$0xf] }
 0x339   :  { %v2617_v55 = vadd.f32 %v2573_v8, %v2496_v47  ;;  %v2885_v48 = vld [vmem:[%s5587_s7] sm:$0xf] }
 0x33e   :  { %v2719_v21 = vpop.f32.mrf.mxu2 }
 0x33f   :  { %v2739_v36 = vpop.f32.mrf.mxu3  ;;  %v2744_v6 = vadd.f32 %v2719_v21, %v2618_v0 }
 0x340   :  { %v2699_v43 = vpop.f32.mrf.mxu1  ;;  %v2745_v1 = vadd.f32 %v2739_v36, %v2619_v42 }
 0x341   :  { %v2679_v15 = vpop.f32.mrf.mxu0  ;;  %v2743_v57 = vadd.f32 %v2699_v43, %v2617_v55 }
 0x342   :  { %v2742_v61 = vadd.f32 %v2679_v15, %v2616_v51 }
 0x346   :  { %v2844_v53 = vpop.f32.mrf.mxu2 }
 0x347   :  { %v2864_v62 = vpop.f32.mrf.mxu3  ;;  %v2869_v9 = vadd.f32 %v2844_v53, %v2744_v6 }
 0x348   :  { %v2824_v56 = vpop.f32.mrf.mxu1  ;;  %v2870_v11 = vadd.f32 %v2864_v62, %v2745_v1 }
 0x349   :  { %v2804_v33 = vpop.f32.mrf.mxu0  ;;  %v2868_v63 = vadd.f32 %v2824_v56, %v2743_v57  ;;  %v2879_v5 = vadd.f32 %v2875_v4, %v2869_v9 }
 0x34a   :  { %v2867_v54 = vadd.f32 %v2804_v33, %v2742_v61  ;;  %v2880_v16 = vadd.f32 %v2875_v4, %v2870_v11  ;;  %v4226_v11 = vld [vmem:[%s5587_s7 + $0x8] sm:$0xf] }
 0x34b   :  { %v2878_v17 = vadd.f32 %v2875_v4, %v2868_v63  ;;  %v5273_v22 = vmax.f32 %v2879_v5, 0.0 }
 0x34c   :  { %v2877_v2 = vadd.f32 %v2875_v4, %v2867_v54  ;;  %v5271_v19 = vmax.f32 %v2880_v16, 0.0 }
 0x34d   :  { %v5263_v13 = vmax.f32 %v2878_v17, 0.0 }
 0x34e   :  { %v5261_v12 = vmax.f32 %v2877_v2, 0.0 }
 0x34f   :  { %2918 = vrot.lane.b32.xlu0 %v5263_v13, %s4304_s2 }
 0x350   :  { %2890 = vrot.lane.b32.xlu2 %v5261_v12, %s4305_s21  ;;  %2916 = vrot.lane.b32.xlu1 %v5261_v12, %s4304_s2 }
 0x357   :  { %2896 = vrot.lane.b32.xlu0 %v5271_v19, %s4305_s21 }
 0x358   :  { %2922 = vrot.lane.b32.xlu2 %v5271_v19, %s4304_s2  ;;  %2920 = vrot.lane.b32.xlu1 %v5273_v22, %s4304_s2 }
 0x35f   :  { %3132 = vrot.lane.b32.xlu0 %v5273_v22, %s4306_s1 }
 0x360   :  { %2894 = vrot.lane.b32.xlu2 %v5273_v22, %s4305_s21  ;;  %2892 = vrot.lane.b32.xlu1 %v5263_v13, %s4305_s21 }
 0x367   :  { %3128 = vrot.lane.b32.xlu0 %v5261_v12, %s4306_s1 }
 0x368   :  { %3130 = vrot.lane.b32.xlu2 %v5263_v13, %s4306_s1  ;;  %3134 = vrot.lane.b32.xlu1 %v5271_v19, %s4306_s1 }
 0x36f   :  { %3255 = vrot.lane.b32.xlu0 %v5263_v13, %s4302_s20 }
 0x370   :  { %3259 = vrot.lane.b32.xlu2 %v5271_v19, %s4302_s20  ;;  %3257 = vrot.lane.b32.xlu1 %v5273_v22, %s4302_s20 }
 0x377   :  { %3471 = vrot.lane.b32.xlu0 %v5261_v12, %s4307_s3 }
 0x378   :  { %3594 = vrot.lane.b32.xlu2 %v5263_v13, %s4308_s28  ;;  %3253 = vrot.lane.b32.xlu1 %v5261_v12, %s4302_s20 }
 0x37f   :  { %3475 = vrot.lane.b32.xlu0 %v5273_v22, %s4307_s3 }
 0x380   :  { %3477 = vrot.lane.b32.xlu2 %v5271_v19, %s4307_s3  ;;  %3473 = vrot.lane.b32.xlu1 %v5263_v13, %s4307_s3 }
 0x387   :  { %3592 = vrot.lane.b32.xlu0 %v5261_v12, %s4308_s28 }
 0x388   :  { %3598 = vrot.lane.b32.xlu2 %v5271_v19, %s4308_s28  ;;  %3596 = vrot.lane.b32.xlu1 %v5273_v22, %s4308_s28 }
 0x38f   :  { %3719 = vrot.lane.b32.xlu0 %v5263_v13, %s4309_s10 }
 0x390   :  { %3721 = vrot.lane.b32.xlu2 %v5273_v22, %s4309_s10  ;;  %3723 = vrot.lane.b32.xlu1 %v5271_v19, %s4309_s10 }
 0x397   :  { %3842 = vrot.lane.b32.xlu0 %v5273_v22, %s4310_s0 }
 0x398   :  { %3717 = vrot.lane.b32.xlu2 %v5261_v12, %s4309_s10  ;;  %3844 = vrot.lane.b32.xlu1 %v5271_v19, %s4310_s0 }
 0x39f   :  { %3964 = vperm.xlu0 %4300, %v3961_v59  }
 0x3a0   :  { %3838 = vrot.lane.b32.xlu2 %v5261_v12, %s4310_s0  ;;  %3840 = vrot.lane.b32.xlu1 %v5263_v13, %s4310_s0 }
 0x3aa   :  { %v2891_v58 = vpop.permute.xlu2 %2890 }
 0x3ab   :  { %v2905_v28 = vsel %vm5633_vm15, 0.0, %v2891_v58  ;;  %vm5638_vm15 = vmmov %vm5636_vm13 }
 0x3ac   :  { %v2906_v10 = vsel %vm4609_vm5, %v2905_v28, 0.0 }
 0x3ad   :  { %v2910_v36 = vsel %vm5638_vm15, %v2906_v10, 0.0  ;;  %vm5642_vm15 = vcmp.ge.s32.totalorder %v4626_v32, 1 }
 0x3b2   :  { %v2923_v8 = vpop.permute.xlu2 %2922 }
 0x3ba   :  { %v2895_v34 = vpop.permute.xlu2 %2894 }
 0x3c1   :  { %v2919_v29 = vpop.permute.xlu0 %2918 }
 0x3c2   :  { %v3131_v30 = vpop.permute.xlu2 %3130  ;;  %v2917_v24 = vpop.permute.xlu1 %2916 }
 0x3c3   :  { %v2924_v23 = vsel %vm5634_vm8, %v2917_v24, %v2919_v29  ;;  %v2931_v37 = vsel %vm5635_vm9, 0.0, %v2917_v24  ;;  %vm5639_vm8 = vcmask 138240  }
 0x3c4   :  { %v2932_v7 = vsel %vm5636_vm13, %v2931_v37, 0.0  ;;  %v2933_v35 = vsel %vm5637_vm10, %v2924_v23, 0.0  ;;  %vm5640_vm10 = vmmov %vm5635_vm9  ;;  %vm5641_vm13 = vcmp.ge.s32.totalorder %v4660_v44, 1  ;;  %v4235_v37 = vld [vmem:[%s5587_s7 + $0xc] sm:$0xf] }
 0x3c5   :  { %4210 = vmatpush.msk.msrb.mxu0 %vm750_vm11, %v2932_v7  ;;  %4212 = vmatpush.msk.msrb.mxu1 %vm750_vm11, %v2933_v35  ;;  %vm5643_vm2 = vmmov %vm5641_vm13 }
 0x3c6   :  { %4213 = vmatmul.msk.f32.vlgmr.msrb.gmra.mxu1 %vm746_vm14, %v4209_v31  ;;  %4211 = vmatmul.msk.f32.vlgmr.msrb.gmra.mxu0 %vm746_vm14, %v4209_v31 }
 0x3c7   :  { %4218 = vmatpush.msk.msra.mxu0 %vm750_vm11, %v2910_v36 }
 0x3c9   :  { %v2897_v40 = vpop.permute.xlu0 %2896 }
 0x3ca   :  { %v3260_v43 = vpop.permute.xlu2 %3259  ;;  %v2900_v15 = vsel %vm5639_vm8, %v2895_v34, %v2897_v40  ;;  %v2921_v18 = vpop.permute.xlu1 %2920  ;;  %vm5644_vm8 = vcmask 121856  }
 0x3cb   :  { %v2909_v41 = vsel %vm4664_vm12, %v2900_v15, 0.0  ;;  %v2925_v39 = vsel %vm5635_vm9, %v2919_v29, %v2921_v18  ;;  %v2926_v21 = vsel %vm5640_vm10, %v2921_v18, %v2923_v8  ;;  %vm5648_vm10 = vmmov %vm5642_vm15 }
 0x3cc   :  { %v2913_v25 = vsel %vm5641_vm13, %v2909_v41, 0.0  ;;  %v2934_v38 = vsel %vm5642_vm15, %v2925_v39, 0.0  ;;  %v2935_v47 = vsel %vm5643_vm2, %v2926_v21, 0.0  ;;  %vm5645_vm2 = vcmask 138240   ;;  %vm5650_vm15 = vmmov %vm5648_vm10  ;;  %v4244_v41 = vld [vmem:[%s5587_s7 + $0x10] sm:$0xf] }
 0x3cd   :  { %4214 = vmatpush.msk.msrb.mxu2 %vm750_vm11, %v2934_v38  ;;  %4216 = vmatpush.msk.msrb.mxu3 %vm750_vm11, %v2935_v47  ;;  %vm5646_vm9 = vmmov %vm5645_vm2  ;;  %vm5649_vm13 = vcmp.ge.s32.totalorder %v4618_v26, 1 }
 0x3ce   :  { %4215 = vmatmul.msk.f32.vlgmr.msrb.gmra.mxu2 %vm746_vm14, %v4209_v31  ;;  %4217 = vmatmul.msk.f32.vlgmr.msrb.gmra.mxu3 %vm746_vm14, %v4209_v31 }
 0x3cf   :  { %4224 = vmatpush.msk.msra.mxu3 %vm750_vm11, %v2913_v25  ;;  %4219 = vmatmul.msk.f32.vlgmr.msra.gmra.mxu0 %vm746_vm14, %v2885_v48 }
 0x3d1   :  { %v3133_v46 = vpop.permute.xlu0 %3132 }
 0x3d2   :  { %v3137_v50 = vsel %vm5644_vm8, %v3131_v30, %v3133_v46  ;;  %v2893_v51 = vpop.permute.xlu1 %2892  ;;  %v5378_v49 = vpop.permute.xlu2 %3594 }
 0x3d3   :  { %v3146_v55 = vsel %vm4858_vm3, %v3137_v50, 0.0  ;;  %v2898_v52 = vsel %vm5645_vm2, %v2891_v58, %v2893_v51  ;;  %v2899_v57 = vsel %vm5646_vm9, %v2893_v51, %v2895_v34  ;;  %vm5651_vm2 = vmmov %vm5644_vm8 }
 0x3d4   :  { %v2907_v61 = vsel %vm4622_vm6, %v2898_v52, 0.0  ;;  %v2908_v33 = vsel %vm4630_vm7, %v2899_v57, 0.0  ;;  %v3150_v56 = vsel %vm5648_vm10, %v3146_v55, 0.0  ;;  %vm5654_vm9 = vmmov %vm5651_vm2  ;;  %vm5655_vm10 = vcmp.ge.s32.totalorder %v4600_v14, 1 }
 0x3d5   :  { %v2911_v42 = vsel %vm5649_vm13, %v2907_v61, 0.0  ;;  %v2912_v54 = vsel %vm5650_vm15, %v2908_v33, 0.0  ;;  %vm5657_vm15 = vcmp.ge.s32.totalorder %v4660_v44, 1 }
 0x3d6   :  { %4220 = vmatpush.msk.msra.mxu1 %vm750_vm11, %v2911_v42  ;;  %4222 = vmatpush.msk.msra.mxu2 %vm750_vm11, %v2912_v54 }
 0x3d7   :  { %4223 = vmatmul.msk.f32.vlgmr.msra.gmra.mxu2 %vm746_vm14, %v2885_v48  ;;  %4225 = vmatmul.msk.f32.vlgmr.msra.gmra.mxu3 %vm746_vm14, %v2885_v48 }
 0x3d8   :  { %4231 = vmatpush.msk.msrb.mxu2 %vm750_vm11, %v3150_v56  ;;  %4221 = vmatmul.msk.f32.vlgmr.msra.gmra.mxu1 %vm746_vm14, %v2885_v48 }
 0x3d9   :  { %v3129_v63 = vpop.permute.xlu0 %3128 }
 0x3da   :  { %v3136_v4 = vsel %vm5644_vm8, %v3129_v63, %v3131_v30  ;;  %v3143_v0 = vsel %vm5651_vm2, 0.0, %v3129_v63  ;;  %v3135_v62 = vpop.permute.xlu1 %3134  ;;  %v3478_v58 = vpop.permute.xlu2 %3477  ;;  %vm5658_vm8 = vcmask 7168  }
 0x3db   :  { %v3144_v53 = vsel %vm4830_vm1, %v3143_v0, 0.0  ;;  %v3145_v17 = vsel %vm4821_vm0, %v3136_v4, 0.0  ;;  %v3138_v6 = vsel %vm5654_vm9, %v3133_v46, %v3135_v62  ;;  %vm5659_vm2 = vmmov %vm5658_vm8  ;;  %vm5660_vm9 = vcmask 1039360   ;;  %v4253_v46 = vld [vmem:[%s5587_s7 + $0x14] sm:$0xf] }
 0x3dc   :  { %v3148_v9 = vsel %vm5655_vm10, %v3144_v53, 0.0  ;;  %v3149_v16 = vsel %vm5649_vm13, %v3145_v17, 0.0  ;;  %v3147_v59 = vsel %vm4892_vm4, %v3138_v6, 0.0  ;;  %v3486_v10 = vsel %vm5660_vm9, %v3478_v58, 0.0  ;;  %vm5662_vm13 = vmmov %vm5659_vm2 }
 0x3dd   :  { %v3151_v8 = vsel %vm5657_vm15, %v3147_v59, 0.0  ;;  %4227 = vmatpush.msk.msrb.mxu0 %vm750_vm11, %v3148_v9  ;;  %4229 = vmatpush.msk.msrb.mxu1 %vm750_vm11, %v3149_v16  ;;  %v3490_v31 = vsel %vm4892_vm4, %v3486_v10, 0.0  ;;  %vm5661_vm10 = vcmask 924672   ;;  %vm5663_vm15 = vmmov %vm5659_vm2  ;;  %v4271_v59 = vld [vmem:[%s5587_s7 + $0x1c] sm:$0xf] }
 0x3de   :  { %4233 = vmatpush.msk.msrb.mxu3 %vm750_vm11, %v3151_v8  ;;  %4228 = vmatmul.msk.f32.vlgmr.msrb.gmra.mxu0 %vm746_vm14, %v4226_v11 }
 0x3df   :  { %4232 = vmatmul.msk.f32.vlgmr.msrb.gmra.mxu2 %vm746_vm14, %v4226_v11  ;;  %4234 = vmatmul.msk.f32.vlgmr.msrb.gmra.mxu3 %vm746_vm14, %v4226_v11 }
 0x3e0   :  { %4230 = vmatmul.msk.f32.vlgmr.msrb.gmra.mxu1 %vm746_vm14, %v4226_v11 }
 0x3e1   :  { %v3256_v34 = vpop.permute.xlu0 %3255 }
 0x3e2   :  { %v3258_v28 = vpop.permute.xlu1 %3257  ;;  %v3599_v7 = vpop.permute.xlu2 %3598 }
 0x3e3   :  { %v3262_v29 = vsel %vm5658_vm8, %v3256_v34, %v3258_v28  ;;  %v3263_v30 = vsel %vm5659_vm2, %v3258_v28, %v3260_v43  ;;  %v3607_v36 = vsel %vm5661_vm10, %v3599_v7, 0.0  ;;  %vm5665_vm8 = vmmov %vm5660_vm9 }
 0x3e4   :  { %v3271_v24 = vsel %vm4630_vm7, %v3262_v29, 0.0  ;;  %v3272_v23 = vsel %vm4664_vm12, %v3263_v30, 0.0  ;;  %v3611_v18 = vsel %vm4664_vm12, %v3607_v36, 0.0  ;;  %vm5664_vm12 = vcmp.le.s32.totalorder %v4660_v44, 14  ;;  %vm5666_vm2 = vmmov %vm5665_vm8 }
 0x3e5   :  { %4240 = vmatpush.msk.msra.mxu2 %vm750_vm11, %v3271_v24  ;;  %4242 = vmatpush.msk.msra.mxu3 %vm750_vm11, %v3272_v23  ;;  %v3615_v45 = vsel %vm5664_vm12, %v3611_v18, 0.0  ;;  %vm5667_vm9 = vmmov %vm5666_vm2  ;;  %vm5670_vm12 = vcmp.le.s32.totalorder %v4600_v14, 14  ;;  %v4280_v23 = vld [vmem:[%s5587_s7 + $0x20] sm:$0xf] }
 0x3e7   :  { %4249 = vmatpush.msk.msrb.mxu2 %vm750_vm11, %v5273_v22  ;;  %4251 = vmatpush.msk.msrb.mxu3 %vm750_vm11, %v5271_v19 }
 0x3e8   :  { %4241 = vmatmul.msk.f32.vlgmr.msra.gmra.mxu2 %vm746_vm14, %v4235_v37  ;;  %4243 = vmatmul.msk.f32.vlgmr.msra.gmra.mxu3 %vm746_vm14, %v4235_v37 }
 0x3e9   :  { %4260 = vmatpush.msk.msra.mxu3 %vm750_vm11, %v3490_v31  ;;  %v3472_v35 = vpop.permute.xlu0 %3471 }
 0x3ea   :  { %v3254_v40 = vpop.permute.xlu1 %3253  ;;  %v3722_v50 = vpop.permute.xlu2 %3721 }
 0x3eb   :  { %v3261_v43 = vsel %vm5662_vm13, %v3254_v40, %v3256_v34  ;;  %v3268_v22 = vsel %vm5663_vm15, 0.0, %v3254_v40  ;;  %vm5668_vm13 = vmmov %vm5661_vm10 }
 0x3ec   :  { %v3269_v19 = vsel %vm4609_vm5, %v3268_v22, 0.0  ;;  %v3270_v15 = vsel %vm4622_vm6, %v3261_v43, 0.0  ;;  %vm5669_vm15 = vmmov %vm5661_vm10 }
 0x3ed   :  { %4236 = vmatpush.msk.msra.mxu0 %vm750_vm11, %v3269_v19  ;;  %4238 = vmatpush.msk.msra.mxu1 %vm750_vm11, %v3270_v15 }
 0x3ee   :  { %4237 = vmatmul.msk.f32.vlgmr.msra.gmra.mxu0 %vm746_vm14, %v4235_v37  ;;  %4239 = vmatmul.msk.f32.vlgmr.msra.gmra.mxu1 %vm746_vm14, %v4235_v37 }
 0x3ef   :  { %4245 = vmatpush.msk.msrb.mxu0 %vm750_vm11, %v5261_v12  ;;  %4247 = vmatpush.msk.msrb.mxu1 %vm750_vm11, %v5263_v13 }
 0x3f0   :  { %4250 = vmatmul.msk.f32.vlgmr.msrb.gmra.mxu2 %vm746_vm14, %v4244_v41  ;;  %4252 = vmatmul.msk.f32.vlgmr.msrb.gmra.mxu3 %vm746_vm14, %v4244_v41 }
 0x3f1   :  { %4269 = vmatpush.msk.msrb.mxu3 %vm750_vm11, %v3615_v45  ;;  %v3476_v39 = vpop.permute.xlu0 %3475 }
 0x3f2   :  { %v3481_v21 = vsel %vm5665_vm8, %v3476_v39, %v3478_v58  ;;  %v3474_v25 = vpop.permute.xlu1 %3473  ;;  %vm5671_vm8 = vcmp.le.s32.totalorder %v4618_v26, 14  ;;  %v3718_v27 = vpop.permute.xlu2 %3717 }
 0x3f3   :  { %v3489_v38 = vsel %vm4858_vm3, %v3481_v21, 0.0  ;;  %v3479_v12 = vsel %vm5666_vm2, %v3472_v35, %v3474_v25  ;;  %v3480_v13 = vsel %vm5667_vm9, %v3474_v25, %v3476_v39  ;;  %vm5672_vm2 = vcmp.le.s32.totalorder %v4626_v32, 14  ;;  %vm5676_vm9 = vmmov %vm5671_vm8 }
 0x3f4   :  { %v3487_v47 = vsel %vm4830_vm1, %v3479_v12, 0.0  ;;  %v3488_v48 = vsel %vm4821_vm0, %v3480_v13, 0.0  ;;  %4258 = vmatpush.msk.msra.mxu2 %vm750_vm11, %v3489_v38 }
 0x3f5   :  { %4254 = vmatpush.msk.msra.mxu0 %vm750_vm11, %v3487_v47  ;;  %4256 = vmatpush.msk.msra.mxu1 %vm750_vm11, %v3488_v48 }
 0x3f6   :  { %4246 = vmatmul.msk.f32.vlgmr.msrb.gmra.mxu0 %vm746_vm14, %v4244_v41  ;;  %4248 = vmatmul.msk.f32.vlgmr.msrb.gmra.mxu1 %vm746_vm14, %v4244_v41 }
 0x3f8   :  { %4259 = vmatmul.msk.f32.vlgmr.msra.gmra.mxu2 %vm746_vm14, %v4253_v46  ;;  %4261 = vmatmul.msk.f32.vlgmr.msra.gmra.mxu3 %vm746_vm14, %v4253_v46 }
 0x3f9   :  { %v3593_v51 = vpop.permute.xlu0 %3592 }
 0x3fa   :  { %v3600_v55 = vsel %vm5661_vm10, %v3593_v51, %v5378_v49  ;;  %v3597_v52 = vpop.permute.xlu1 %3596  ;;  %v3839_v32 = vpop.permute.xlu2 %3838 }
 0x3fb   :  { %v3608_v57 = vsel %vm4609_vm5, %v3600_v55, 0.0  ;;  %v3601_v61 = vsel %vm5668_vm13, %v5378_v49, %v3597_v52  ;;  %v3602_v33 = vsel %vm5669_vm15, %v3597_v52, %v3599_v7  ;;  %v4262_v49 = vld [vmem:[%s5587_s7 + $0x18] sm:$0xf]  ;;  %vm5673_vm5 = vcmask 916480   ;;  %vm5679_vm15 = vmmov %vm5672_vm2 }
 0x3fc   :  { %v3612_v56 = vsel %vm5670_vm12, %v3608_v57, 0.0  ;;  %v3609_v42 = vsel %vm4622_vm6, %v3601_v61, 0.0  ;;  %v3610_v54 = vsel %vm4630_vm7, %v3602_v33, 0.0  ;;  %vm5674_vm6 = vmmov %vm5673_vm5 }
 0x3fd   :  { %v3613_v63 = vsel %vm5671_vm8, %v3609_v42, 0.0  ;;  %v3614_v20 = vsel %vm5672_vm2, %v3610_v54, 0.0  ;;  %4263 = vmatpush.msk.msrb.mxu0 %vm750_vm11, %v3612_v56  ;;  %vm5675_vm7 = vmmov %vm5670_vm12  ;;  %vm5680_vm12 = vcmp.le.s32.totalorder %v4660_v44, 14  ;;  %vm5681_vm8 = vcmask 908288  }
 0x3fe   :  { %4255 = vmatmul.msk.f32.vlgmr.msra.gmra.mxu0 %vm746_vm14, %v4253_v46  ;;  %4257 = vmatmul.msk.f32.vlgmr.msra.gmra.mxu1 %vm746_vm14, %v4253_v46  ;;  %vm5677_vm10 = vmmov %vm5673_vm5 }
 0x3ff   :  { %4265 = vmatpush.msk.msrb.mxu1 %vm750_vm11, %v3613_v63  ;;  %4267 = vmatpush.msk.msrb.mxu2 %vm750_vm11, %v3614_v20  ;;  %vm5678_vm13 = vmmov %vm5673_vm5 }
 0x400   :  { %4268 = vmatmul.msk.f32.vlgmr.msrb.gmra.mxu2 %vm746_vm14, %v4262_v49  ;;  %4270 = vmatmul.msk.f32.vlgmr.msrb.gmra.mxu3 %vm746_vm14, %v4262_v49  ;;  %vm5682_vm2 = vmmov %vm5681_vm8 }
 0x401   :  { %v3720_v60 = vpop.permute.xlu0 %3719 }
 0x402   :  { %v3725_v4 = vsel %vm5673_vm5, %v3718_v27, %v3720_v60  ;;  %v3726_v0 = vsel %vm5674_vm6, %v3720_v60, %v3722_v50  ;;  %v3724_v62 = vpop.permute.xlu1 %3723  ;;  %vm5683_vm5 = vmmov %vm5679_vm15 }
 0x403   :  { %v3733_v53 = vsel %vm5675_vm7, %v3725_v4, 0.0  ;;  %v3734_v17 = vsel %vm5676_vm9, %v3726_v0, 0.0  ;;  %v3727_v6 = vsel %vm5677_vm10, %v3722_v50, %v3724_v62  ;;  %v3732_v11 = vsel %vm5678_vm13, %v3724_v62, 0.0  ;;  %vm5684_vm6 = vmmov %vm5680_vm12 }
 0x404   :  { %v3735_v9 = vsel %vm5679_vm15, %v3727_v6, 0.0  ;;  %v3736_v16 = vsel %vm5680_vm12, %v3732_v11, 0.0  ;;  %4272 = vmatpush.msk.msra.mxu0 %vm750_vm11, %v3733_v53  ;;  %4274 = vmatpush.msk.msra.mxu1 %vm750_vm11, %v3734_v17 }
 0x405   :  { %4276 = vmatpush.msk.msra.mxu2 %vm750_vm11, %v3735_v9  ;;  %4278 = vmatpush.msk.msra.mxu3 %vm750_vm11, %v3736_v16 }
 0x406   :  { %4264 = vmatmul.msk.f32.vlgmr.msrb.gmra.mxu0 %vm746_vm14, %v4262_v49  ;;  %4266 = vmatmul.msk.f32.vlgmr.msrb.gmra.mxu1 %vm746_vm14, %v4262_v49 }
 0x408   :  { %4277 = vmatmul.msk.f32.vlgmr.msra.gmra.mxu2 %vm746_vm14, %v4271_v59  ;;  %4279 = vmatmul.msk.f32.vlgmr.msra.gmra.mxu3 %vm746_vm14, %v4271_v59 }
 0x409   :  { %v3843_v58 = vpop.permute.xlu0 %3842 }
 0x40a   :  { %v3845_v8 = vpop.permute.xlu1 %3844 }
 0x40b   :  { %v3848_v34 = vsel %vm5681_vm8, %v3843_v58, %v3845_v8  ;;  %v3853_v28 = vsel %vm5682_vm2, %v3845_v8, 0.0 }
 0x40c   :  { %v3856_v29 = vsel %vm4858_vm3, %v3848_v34, 0.0  ;;  %v3857_v30 = vsel %vm4892_vm4, %v3853_v28, 0.0  ;;  %vm5685_vm3 = vmmov %vm5682_vm2 }
 0x40d   :  { %v3860_v10 = vsel %vm5683_vm5, %v3856_v29, 0.0  ;;  %v3861_v24 = vsel %vm5684_vm6, %v3857_v30, 0.0  ;;  %vm5686_vm4 = vmmov %vm5682_vm2 }
 0x40e   :  { %4273 = vmatmul.msk.f32.vlgmr.msra.gmra.mxu0 %vm746_vm14, %v4271_v59  ;;  %4275 = vmatmul.msk.f32.vlgmr.msra.gmra.mxu1 %vm746_vm14, %v4271_v59 }
 0x40f   :  { %4285 = vmatpush.msk.msrb.mxu2 %vm750_vm11, %v3860_v10  ;;  %4287 = vmatpush.msk.msrb.mxu3 %vm750_vm11, %v3861_v24 }
 0x410   :  { %4286 = vmatmul.msk.f32.vlgmr.msrb.gmra.mxu2 %vm746_vm14, %v4280_v23  ;;  %4288 = vmatmul.msk.f32.vlgmr.msrb.gmra.mxu3 %vm746_vm14, %v4280_v23 }
 0x412   :  { %v3841_v3 = vpop.permute.xlu1 %3840 }
 0x413   :  { %v3846_v44 = vsel %vm5685_vm3, %v3839_v32, %v3841_v3  ;;  %v3847_v5 = vsel %vm5686_vm4, %v3841_v3, %v3843_v58 }
 0x414   :  { %v3854_v37 = vsel %vm4830_vm1, %v3846_v44, 0.0  ;;  %v3855_v31 = vsel %vm4821_vm0, %v3847_v5, 0.0 }
 0x415   :  { %v3858_v7 = vsel %vm5675_vm7, %v3854_v37, 0.0  ;;  %v3859_v35 = vsel %vm5676_vm9, %v3855_v31, 0.0 }
 0x416   :  { %4281 = vmatpush.msk.msrb.mxu0 %vm750_vm11, %v3858_v7  ;;  %4283 = vmatpush.msk.msrb.mxu1 %vm750_vm11, %v3859_v35 }
 0x417   :  { %4282 = vmatmul.msk.f32.vlgmr.msrb.gmra.mxu0 %vm746_vm14, %v4280_v23  ;;  %4284 = vmatmul.msk.f32.vlgmr.msrb.gmra.mxu1 %vm746_vm14, %v4280_v23 }
 0x443   :  { %v2988_v36 = vpop.f32.mrf.mxu1  ;;  %v2968_v1 = vpop.f32.mrf.mxu0 }
 0x44c   :  { %v3063_v22 = vpop.f32.mrf.mxu0 }
 0x44d   :  { %v3064_v54 = vadd.f32 %v3063_v22, %v2968_v1 }
 0x451   :  { %v3008_v40 = vpop.f32.mrf.mxu2  ;;  %v3028_v43 = vpop.f32.mrf.mxu3 }
 0x455   :  { %v3083_v2 = vpop.f32.mrf.mxu1 }
 0x456   :  { %v3084_v42 = vadd.f32 %v3083_v2, %v2988_v36 }
 0x45a   :  { %v3103_v19 = vpop.f32.mrf.mxu2  ;;  %v3123_v14 = vpop.f32.mrf.mxu3 }
 0x45b   :  { %v3184_v41 = vpop.f32.mrf.mxu0  ;;  %v3104_v33 = vadd.f32 %v3103_v19, %v3008_v40  ;;  %v3124_v56 = vadd.f32 %v3123_v14, %v3028_v43  ;;  %v3965_v40 = vpop.permute.xlu0 %3964 }
 0x45c   :  { %v3247_v27 = vadd.f32 %v3184_v41, %v3064_v54 }
 0x45d   :  { %v3204_v26 = vpop.f32.mrf.mxu1 }
 0x45e   :  { %v3248_v49 = vadd.f32 %v3204_v26, %v3084_v42 }
 0x462   :  { %v3224_v15 = vpop.f32.mrf.mxu2  ;;  %v3244_v18 = vpop.f32.mrf.mxu3 }
 0x463   :  { %v3249_v63 = vadd.f32 %v3224_v15, %v3104_v33  ;;  %v3250_v20 = vadd.f32 %v3244_v18, %v3124_v56 }
 0x46b   :  { %v3345_v45 = vpop.f32.mrf.mxu2  ;;  %v3365_v39 = vpop.f32.mrf.mxu3 }
 0x46c   :  { %v3305_v21 = vpop.f32.mrf.mxu0  ;;  %v3325_v25 = vpop.f32.mrf.mxu1  ;;  %v3370_v60 = vadd.f32 %v3345_v45, %v3249_v63  ;;  %v3371_v4 = vadd.f32 %v3365_v39, %v3250_v20 }
 0x46d   :  { %v3368_v0 = vadd.f32 %v3305_v21, %v3247_v27  ;;  %v3369_v62 = vadd.f32 %v3325_v25, %v3248_v49 }
 0x473   :  { %v3442_v38 = vpop.f32.mrf.mxu2  ;;  %v3462_v12 = vpop.f32.mrf.mxu3 }
 0x474   :  { %v3402_v13 = vpop.f32.mrf.mxu0  ;;  %v3422_v47 = vpop.f32.mrf.mxu1  ;;  %v3467_v6 = vadd.f32 %v3442_v38, %v3370_v60  ;;  %v3468_v11 = vadd.f32 %v3462_v12, %v3371_v4 }
 0x475   :  { %v3465_v59 = vadd.f32 %v3402_v13, %v3368_v0  ;;  %v3466_v58 = vadd.f32 %v3422_v47, %v3369_v62 }
 0x47b   :  { %v3563_v48 = vpop.f32.mrf.mxu2  ;;  %v3583_v46 = vpop.f32.mrf.mxu3 }
 0x47c   :  { %v3523_v50 = vpop.f32.mrf.mxu0  ;;  %v3543_v51 = vpop.f32.mrf.mxu1  ;;  %v3588_v8 = vadd.f32 %v3563_v48, %v3467_v6  ;;  %v3589_v34 = vadd.f32 %v3583_v46, %v3468_v11 }
 0x47d   :  { %v3586_v28 = vadd.f32 %v3523_v50, %v3465_v59  ;;  %v3587_v29 = vadd.f32 %v3543_v51, %v3466_v58 }
 0x483   :  { %v3688_v55 = vpop.f32.mrf.mxu2  ;;  %v3708_v52 = vpop.f32.mrf.mxu3 }
 0x484   :  { %v3648_v57 = vpop.f32.mrf.mxu0  ;;  %v3668_v61 = vpop.f32.mrf.mxu1  ;;  %v3713_v30 = vadd.f32 %v3688_v55, %v3588_v8  ;;  %v3714_v10 = vadd.f32 %v3708_v52, %v3589_v34 }
 0x485   :  { %v3711_v24 = vadd.f32 %v3648_v57, %v3586_v28  ;;  %v3712_v23 = vadd.f32 %v3668_v61, %v3587_v29 }
 0x48b   :  { %v3809_v53 = vpop.f32.mrf.mxu2  ;;  %v3829_v17 = vpop.f32.mrf.mxu3 }
 0x48c   :  { %v3769_v9 = vpop.f32.mrf.mxu0  ;;  %v3789_v16 = vpop.f32.mrf.mxu1  ;;  %v3834_v32 = vadd.f32 %v3809_v53, %v3713_v30  ;;  %v3835_v3 = vadd.f32 %v3829_v17, %v3714_v10 }
 0x48d   :  { %v3832_v44 = vadd.f32 %v3769_v9, %v3711_v24  ;;  %v3833_v5 = vadd.f32 %v3789_v16, %v3712_v23 }
 0x493   :  { %v3934_v37 = vpop.f32.mrf.mxu2  ;;  %v3954_v31 = vpop.f32.mrf.mxu3 }
 0x494   :  { %v3959_v7 = vadd.f32 %v3934_v37, %v3834_v32  ;;  %v3960_v35 = vadd.f32 %v3954_v31, %v3835_v3  ;;  %v3894_v36 = vpop.f32.mrf.mxu0  ;;  %v3914_v1 = vpop.f32.mrf.mxu1 }
 0x495   :  { %v3957_v43 = vadd.f32 %v3894_v36, %v3832_v44  ;;  %v3958_v2 = vadd.f32 %v3914_v1, %v3833_v5 }
 0x496   :  { %v3969_v22 = vadd.f32 %v3965_v40, %v3959_v7  ;;  %v3970_v19 = vadd.f32 %v3965_v40, %v3960_v35 }
 0x497   :  { %v3967_v14 = vadd.f32 %v3965_v40, %v3957_v43  ;;  %v3968_v15 = vadd.f32 %v3965_v40, %v3958_v2 }
 0x498   :  { %v3974_v18 = vmax.f32 %v3970_v19, 0.0  ;;  %v3973_v41 = vmax.f32 %v3969_v22, 0.0 }
 0x499   :  { %v3972_v26 = vmax.f32 %v3968_v15, 0.0  ;;  %v3971_v39 = vmax.f32 %v3967_v14, 0.0 }
 0x49a   :  { %v3983_v45 = vrot.slane %v3974_v18, 4 }
 0x49b   :  { %v3977_v21 = vrot.slane %v3972_v26, 4 }
 0x49c   :  { %v3984_v25 = vsel %vm750_vm11, %v3973_v41, %v3983_v45 }
 0x49d   :  { %4289 = vst [vmem:[%s5588_s9 + $0x8] sm:$0xff] %v3984_v25  ;;  %v3978_v38 = vsel %vm750_vm11, %v3971_v39, %v3977_v21 }
 0x49e   :  { %3980 = vst [vmem:[%s5588_s9] sm:$0xff] %v3978_v38 }

</bundles_post_ra>
